<compile_context>
chip_gen: v6e
topology: v6e:2x2x1
jax: 0.10.0
libtpu: 0.0.40
codegen_flags: <defaults>
</compile_context>

<pallas_src>
import functools

import jax
import jax.numpy as jnp
from jax.experimental import pallas as pl
from jax.experimental.pallas import tpu as pltpu


def patch_embed_kernel(w_ref, patch_ref, pos_ref, o_ref):
    # w_ref: (E, K) bf16   patch_ref: (K, N) bf16   pos_ref: (E, N) f32
    # o_ref: (E, N) f32
    acc = jnp.dot(w_ref[...], patch_ref[...], preferred_element_type=jnp.float32)
    o_ref[...] = (acc + pos_ref[...]).astype(o_ref.dtype)


def prepare_params(conv_w, conv_b, pos_emb):
    """One-time host prep of kernel-ready parameters (hoisted out of forward)."""
    E = conv_w.shape[0]
    K = conv_w.shape[1] * conv_w.shape[2] * conv_w.shape[3]
    N = pos_emb.shape[1]
    # (E, C, p, p) -> (E, K): lane-dense in K, no transpose needed.
    w_ek = conv_w.reshape(E, K).astype(jnp.bfloat16)
    # Fold conv bias into the positional embedding; pre-transpose to (E, N).
    pos_t = (pos_emb.reshape(N, E) + conv_b.reshape(1, E)).T.astype(jnp.float32)
    return w_ek, pos_t


@functools.partial(jax.jit, static_argnames=("patch_size",))
def input_layer_forward(x, w_ek, pos_t, patch_size):
    B, C, H, W = x.shape
    p = patch_size
    Hp, Wp = H // p, W // p
    N = Hp * Wp
    E, K = w_ek.shape

    # Patch extraction in the (K, N) "transposed" layout, bf16 for the MXU:
    # patches_t[b, (c*p + i)*p + j, hp*Wp + wp] = x[b, c, hp*p + i, wp*p + j]
    # (XLA glue; allow_input_fusion below lets XLA fuse it into the kernel input.)
    xb = x.astype(jnp.bfloat16)
    patches_t = (
        xb.reshape(B, C, Hp, p, Wp, p)
        .transpose(0, 1, 3, 5, 2, 4)
        .reshape(B, K, N)
    )

    out = pl.pallas_call(
        patch_embed_kernel,
        out_shape=jax.ShapeDtypeStruct((B, E, N), jnp.float32),
        grid_spec=pltpu.PrefetchScalarGridSpec(
            num_scalar_prefetch=0,
            grid=(B,),
            in_specs=[
                pl.BlockSpec((E, K), lambda b: (0, 0)),                    # weight (grid-invariant)
                pl.BlockSpec((pl.Squeezed(), K, N), lambda b: (b, 0, 0)),  # patches (per batch)
                pl.BlockSpec((E, N), lambda b: (0, 0)),                    # pos + bias (grid-invariant)
            ],
            out_specs=pl.BlockSpec((pl.Squeezed(), E, N), lambda b: (b, 0, 0)),
        ),
        compiler_params=pltpu.CompilerParams(
            dimension_semantics=("parallel",),
            allow_input_fusion=[False, True, False],
        ),
    )(w_ek, patches_t, pos_t)

    # (B, E, N) -> (B, E, Hp, Wp): minor-dim split only -> free view, no transpose.
    return out.reshape(B, E, Hp, Wp)


if __name__ == "__main__":
    # Module hyper-params (image_size is hardcoded to (192, 256) in __init__,
    # so the input spatial dims must be 192 x 256 for the pos-emb add to match).
    in_channels = 4
    embed_dim = 32
    patch_size = 32
    H, W = 192, 256
    B = 2
    Hp, Wp = H // patch_size, W // patch_size
    nb_patch = Hp * Wp  # 6 * 8 = 48

    key = jax.random.PRNGKey(0)
    k_x, k_w, k_b, k_p = jax.random.split(key, 4)

    x = jax.random.normal(k_x, (B, in_channels, H, W), dtype=jnp.float32)
    conv_w = jax.random.normal(
        k_w, (embed_dim, in_channels, patch_size, patch_size), dtype=jnp.float32) * 0.02
    conv_b = jax.random.normal(k_b, (embed_dim,), dtype=jnp.float32) * 0.02
    pos_emb = jax.random.normal(k_p, (1, nb_patch, embed_dim), dtype=jnp.float32)

    w_ek, pos_t = prepare_params(conv_w, conv_b, pos_emb)  # one-time prep
    out = input_layer_forward(x, w_ek, pos_t, patch_size)
    out = jax.block_until_ready(out)
    assert out.shape == (B, embed_dim, Hp, Wp), out.shape

    # Reference 1: conv with bf16 operands + f32 accumulation (same precision
    # as the kernel's MXU path) -> tight tolerance.
    ref_bf = jax.lax.conv_general_dilated(
        x.astype(jnp.bfloat16), conv_w.astype(jnp.bfloat16),
        window_strides=(patch_size, patch_size), padding="VALID",
        dimension_numbers=("NCHW", "OIHW", "NCHW"),
        preferred_element_type=jnp.float32)
    ref_bf = ref_bf + conv_b.reshape(1, embed_dim, 1, 1)
    ref_bf = ref_bf.reshape(B, embed_dim, nb_patch).transpose(0, 2, 1) + pos_emb
    ref_bf = ref_bf.transpose(0, 2, 1).reshape(B, embed_dim, Hp, Wp)
    assert jnp.allclose(out, ref_bf, atol=2e-3, rtol=2e-3), \
        float(jnp.max(jnp.abs(out - ref_bf)))

    # Reference 2: full-f32 conv (PyTorch semantics) -> loose tolerance that
    # accounts for the bf16 operand quantization over K=4096.
    ref = jax.lax.conv_general_dilated(
        x, conv_w, window_strides=(patch_size, patch_size), padding="VALID",
        dimension_numbers=("NCHW", "OIHW", "NCHW"))
    ref = ref + conv_b.reshape(1, embed_dim, 1, 1)
    ref = ref.reshape(B, embed_dim, nb_patch).transpose(0, 2, 1) + pos_emb
    ref = ref.transpose(0, 2, 1).reshape(B, embed_dim, Hp, Wp)
    assert jnp.allclose(out, ref, atol=5e-2, rtol=5e-2), \
        float(jnp.max(jnp.abs(out - ref)))

    print("KERNEL_OK")
</pallas_src>

<mosaic_0001>
module attributes {stable_mosaic.version = 11 : i64} {
  func.func @patch_embed_kernel(%arg0: i32, %arg1: memref<32x4096xbf16, #tpu.memory_space<vmem>>, %arg2: memref<1x4096x48xbf16, #tpu.memory_space<vmem>>, %arg3: memref<32x48xf32, #tpu.memory_space<vmem>>, %arg4: memref<1x32x48xf32, #tpu.memory_space<vmem>>) attributes {dimension_semantics = [#tpu.dimension_semantics<parallel>], iteration_bounds = array<i64: 2>, scalar_prefetch = 0 : i64, scratch_operands = 0 : i64, tpu.core_type = #tpu.core_type<tc>, window_params = [{pipeline_mode = #tpu.pipeline_mode<synchronous>, transform_indices = @transform_0, window_bounds = array<i64: 32, 4096>}, {transform_indices = @transform_1, window_bounds = array<i64: 1, 4096, 48>}, {pipeline_mode = #tpu.pipeline_mode<synchronous>, transform_indices = @transform_2, window_bounds = array<i64: 32, 48>}, {transform_indices = @transform_3, window_bounds = array<i64: 1, 32, 48>}]} {
    %c0 = arith.constant 0 : index
    %c0_0 = arith.constant 0 : index
    %0 = vector.load %arg1[%c0, %c0_0] : memref<32x4096xbf16, #tpu.memory_space<vmem>>, vector<32x4096xbf16>
    %c0_1 = arith.constant 0 : index
    %c0_2 = arith.constant 0 : index
    %c0_3 = arith.constant 0 : index
    %1 = vector.load %arg2[%c0_1, %c0_2, %c0_3] : memref<1x4096x48xbf16, #tpu.memory_space<vmem>>, vector<1x4096x48xbf16>
    %2 = vector.shape_cast %1 : vector<1x4096x48xbf16> to vector<4096x48xbf16>
    %cst = arith.constant dense<0.000000e+00> : vector<32x48xf32>
    %3 = tpu.matmul %0, %2, %cst {dimension_numbers = #tpu.dot_dimension_numbers<[1], [0], [0], [1], [0, 0, 1, 1], [], []>} : vector<32x4096xbf16>, vector<4096x48xbf16>, vector<32x48xf32> -> vector<32x48xf32>
    %c0_4 = arith.constant 0 : index
    %c0_5 = arith.constant 0 : index
    %4 = vector.load %arg3[%c0_4, %c0_5] : memref<32x48xf32, #tpu.memory_space<vmem>>, vector<32x48xf32>
    %5 = arith.addf %3, %4 : vector<32x48xf32>
    %c0_6 = arith.constant 0 : index
    %c0_7 = arith.constant 0 : index
    %c0_8 = arith.constant 0 : index
    %6 = vector.load %arg4[%c0_6, %c0_7, %c0_8] : memref<1x32x48xf32, #tpu.memory_space<vmem>>, vector<1x32x48xf32>
    %7 = vector.shape_cast %6 : vector<1x32x48xf32> to vector<32x48xf32>
    %8 = vector.shape_cast %5 : vector<32x48xf32> to vector<1x32x48xf32>
    tpu.vector_store %arg4[%c0_6, %c0_7, %c0_8], %8 {strides = array<i32>} : memref<1x32x48xf32, #tpu.memory_space<vmem>>, vector<1x32x48xf32>,
    return
  }
  func.func @transform_0(%arg0: i32) -> (i32, i32) {
    %c0_i32 = arith.constant 0 : i32
    %c0_i32_0 = arith.constant 0 : i32
    %c0_i32_1 = arith.constant 0 : i32
    return %c0_i32, %c0_i32_0 : i32, i32
  }
  func.func @transform_1(%arg0: i32) -> (i32, i32, i32) {
    %c0_i32 = arith.constant 0 : i32
    %c0_i32_0 = arith.constant 0 : i32
    %c0_i32_1 = arith.constant 0 : i32
    return %arg0, %c0_i32, %c0_i32_0 : i32, i32, i32
  }
  func.func @transform_2(%arg0: i32) -> (i32, i32) {
    %c0_i32 = arith.constant 0 : i32
    %c0_i32_0 = arith.constant 0 : i32
    %c0_i32_1 = arith.constant 0 : i32
    return %c0_i32, %c0_i32_0 : i32, i32
  }
  func.func @transform_3(%arg0: i32) -> (i32, i32, i32) {
    %c0_i32 = arith.constant 0 : i32
    %c0_i32_0 = arith.constant 0 : i32
    %c0_i32_1 = arith.constant 0 : i32
    return %arg0, %c0_i32, %c0_i32_0 : i32, i32, i32
  }
}

</mosaic_0001>

<bundles_post_ra>
// kernel: input_layer_forward.1
= control target key start
LH: loop header
LB: loop body
LE: loop exit
PB: predicated region body
PF: predicated region fallthrough
CT: control target
= control target key end

     0   :  { %s4525_s12 = smov 0   ;;  %s5259_s0 = inlined_call_operand.vmem [shape: bf16[32,4096], index: 0, kind: input, shape index: {}]   ;;  %s5260_s1 = inlined_call_operand.vmem [shape: bf16[2,4096,48], index: 1, kind: input, shape index: {}]   ;;  %s5261_s2 = inlined_call_operand.vmem [shape: f32[32,48], index: 2, kind: input, shape index: {}]   ;;  %s5262_s3 = inlined_call_operand.vmem [shape: f32[2,32,48], index: 3, kind: output, shape index: {}]  }
   0x1 LB: > { %s3452_s13 = sadd.s32 4294967295, %s4503_s12   ;;  %p3456_p0 = scmp.ge.s32.totalorder %s4503_s12, 1  ;;  %s4503_s12 = sphi %s4525_s12, %s13_s12  }
   0x2   : > { %p137_p1 = scmp.lt.s32.totalorder %s4503_s12, 3 }
   0x4   : > { %p138_p2 = pnand %p3456_p0, %p137_p1 }
   0x6   : > { %141 = sbr.rel (%p138_p2) target bundleno = 488 (0x1e8), region = 32 }
   0xb   : > { %p161_p3 = scmp.lt.s32.totalorder %s3452_s13, 1  ;;  %v4536_v0 = vld [vmem:[%s5259_s0] sm:$0xff]  ;;  %v4546_v2 = vld [vmem:[%s5259_s0 + $0x8] sm:$0xff]  ;;  %v4621_v51 = vld [vmem:[%s5259_s0 + $0x10] sm:$0xff]  ;;  %vm3392_vm0 = vcmask 392192  }
   0xc   : > { %v4541_v1 = vld [vmem:[%s5259_s0 + $0x80] sm:$0xff]  ;;  %v4553_v4 = vld [vmem:[%s5259_s0 + $0x88] sm:$0xff]  ;;  %v4626_v52 = vld [vmem:[%s5259_s0 + $0x90] sm:$0xff] }
   0xd   : > { %v3462_v3 = vcombine.high %v4536_v0, %v4541_v1  ;;  %s5296_s13 = smov (!%p161_p3, %s3452_s13), 1  ;;  %v3464_v5 = vcombine.high %v4546_v2, %v4553_v4  ;;  %v204_v35 = vld [vmem:[%s5259_s0 + $0x100] sm:$0xff]  ;;  %v205_v38 = vld [vmem:[%s5259_s0 + $0x108] sm:$0xff]  ;;  %v3461_v42 = vcombine.low %v4536_v0, %v4541_v1  ;;  %v3463_v43 = vcombine.low %v4546_v2, %v4553_v4  ;;  %v4632_v54 = vld [vmem:[%s5259_s0 + $0x18] sm:$0xff] }
   0xe   : > { %s3783_s22 = sshll.u32 %s5296_s13, 11  ;;  %v220_v36 = vld [vmem:[%s5259_s0 + $0x180] sm:$0xff]  ;;  %v221_v39 = vld [vmem:[%s5259_s0 + $0x188] sm:$0xff]  ;;  %v4637_v55 = vld [vmem:[%s5259_s0 + $0x98] sm:$0xff]  ;;  %v3466_v62 = vcombine.high %v4621_v51, %v4626_v52  ;;  %s3784_s6 = sshll.u32 %s5296_s13, 5 }
   0xf   : > { %2640 = vmatprep.mubr.bf16.mxu0 %v3462_v3  ;;  %2689 = vmatprep.mubr.bf16.mxu1 %v3464_v5  ;;  %s4563_s25 = scalar_lea.vmem %s5260_s1, %s3783_s22  ;;  %v3494_v46 = vcombine.high %v204_v35, %v220_v36  ;;  %v3496_v48 = vcombine.high %v205_v38, %v221_v39  ;;  %v3493_v58 = vcombine.low %v204_v35, %v220_v36  ;;  %v4693_v35 = vld [vmem:[%s5259_s0 + $0x20] sm:$0xff]  ;;  %s5246_s9 = scalar_lea.vmem %s5262_s3, %s3784_s6 }
  0x10   : > { %v4241_v6 = vld [vmem:[%s4563_s25 + $0x78] sm:$0xff]   ;;  %v4245_v10 = vld [vmem:[%s4563_s25 + $0x70] sm:$0xff]   ;;  %v4249_v14 = vld [vmem:[%s4563_s25 + $0x68] sm:$0xff]   ;;  %v3495_v60 = vcombine.low %v205_v38, %v221_v39  ;;  %v3468_v0 = vcombine.high %v4632_v54, %v4637_v55 }
  0x11   : > { %v4242_v7 = vld [vmem:[%s4563_s25 + $0xf8] sm:$0xff]   ;;  %3785 = vmatprep.subr.bf16.mxu0 %v4241_v6  ;;  %v4246_v11 = vld [vmem:[%s4563_s25 + $0xf0] sm:$0xff]   ;;  %v4250_v15 = vld [vmem:[%s4563_s25 + $0xe8] sm:$0xff]  }
  0x12   : > { %v4243_v8 = vld [vmem:[%s4563_s25 + $0x38] sm:$0xff]   ;;  %3813 = vmatprep.subr.bf16.mxu1 %v4242_v7  ;;  %v4247_v12 = vld [vmem:[%s4563_s25 + $0x30] sm:$0xff]   ;;  %v4251_v16 = vld [vmem:[%s4563_s25 + $0x28] sm:$0xff]  }
  0x13   : > { %v4244_v9 = vld [vmem:[%s4563_s25 + $0xb8] sm:$0xff]   ;;  %3786 = vmatpush3.bf16.msra.mxu0 %v4243_v8  ;;  %v4248_v13 = vld [vmem:[%s4563_s25 + $0xb0] sm:$0xff]   ;;  %v4252_v17 = vld [vmem:[%s4563_s25 + $0xa8] sm:$0xff]  }
  0x14   : > { %3814 = vmatpush3.bf16.msra.mxu1 %v4244_v9  ;;  %3787 = vmatprep.subr.bf16.mxu0 %v4245_v10  ;;  %v4253_v18 = vld [vmem:[%s4563_s25 + $0x60] sm:$0xff]   ;;  %v4257_v22 = vld [vmem:[%s4563_s25 + $0x58] sm:$0xff]   ;;  %v4261_v26 = vld [vmem:[%s4563_s25 + $0x50] sm:$0xff]  }
  0x15   : > { %3815 = vmatprep.subr.bf16.mxu1 %v4246_v11  ;;  %v4254_v19 = vld [vmem:[%s4563_s25 + $0xe0] sm:$0xff]   ;;  %v4258_v23 = vld [vmem:[%s4563_s25 + $0xd8] sm:$0xff]   ;;  %v4262_v27 = vld [vmem:[%s4563_s25 + $0xd0] sm:$0xff]  }
  0x16   : > { %v4255_v20 = vld [vmem:[%s4563_s25 + $0x20] sm:$0xff]   ;;  %v4259_v24 = vld [vmem:[%s4563_s25 + $0x18] sm:$0xff]   ;;  %v4263_v28 = vld [vmem:[%s4563_s25 + $0x10] sm:$0xff]  }
  0x17   : > { %3788 = vmatpush3.bf16.msra.mxu0 %v4247_v12  ;;  %v4256_v21 = vld [vmem:[%s4563_s25 + $0xa0] sm:$0xff]   ;;  %v4260_v25 = vld [vmem:[%s4563_s25 + $0x98] sm:$0xff]   ;;  %v4264_v29 = vld [vmem:[%s4563_s25 + $0x90] sm:$0xff]  }
  0x18   : > { %3816 = vmatpush3.bf16.msra.mxu1 %v4248_v13  ;;  %3789 = vmatprep.subr.bf16.mxu0 %v4249_v14  ;;  %v4265_v30 = vld [vmem:[%s4563_s25 + $0x48] sm:$0xff]   ;;  %v4269_v34 = vld [vmem:[%s4563_s25 + $0x40] sm:$0xff]   ;;  %v4273_v44 = vld [vmem:[%s4563_s25 + $0x178] sm:$0xff]  }
  0x19   : > { %3817 = vmatprep.subr.bf16.mxu1 %v4250_v15  ;;  %v4266_v31 = vld [vmem:[%s4563_s25 + $0xc8] sm:$0xff]   ;;  %v4270_v37 = vld [vmem:[%s4563_s25 + $0xc0] sm:$0xff]   ;;  %v4274_v45 = vld [vmem:[%s4563_s25 + $0x1f8] sm:$0xff]  }
  0x1a   : > { %v4267_v32 = vld [vmem:[%s4563_s25 + $0x8] sm:$0xff]   ;;  %v4271_v40 = vld [vmem:[%s4563_s25] sm:$0xff]   ;;  %v4275_v47 = vld [vmem:[%s4563_s25 + $0x138] sm:$0xff]  }
  0x1b   : > { %3790 = vmatpush3.bf16.msra.mxu0 %v4251_v16  ;;  %v4268_v33 = vld [vmem:[%s4563_s25 + $0x88] sm:$0xff]   ;;  %v4272_v41 = vld [vmem:[%s4563_s25 + $0x80] sm:$0xff]   ;;  %v4276_v49 = vld [vmem:[%s4563_s25 + $0x1b8] sm:$0xff]  }
  0x1c   : > { %3818 = vmatpush3.bf16.msra.mxu1 %v4252_v17  ;;  %3791 = vmatprep.subr.bf16.mxu0 %v4253_v18  ;;  %v4277_v50 = vld [vmem:[%s4563_s25 + $0x170] sm:$0xff]   ;;  %v4281_v59 = vld [vmem:[%s4563_s25 + $0x168] sm:$0xff]   ;;  %v4285_v2 = vld [vmem:[%s4563_s25 + $0x160] sm:$0xff]  }
  0x1d   : > { %3819 = vmatprep.subr.bf16.mxu1 %v4254_v19  ;;  %v4278_v53 = vld [vmem:[%s4563_s25 + $0x1f0] sm:$0xff]   ;;  %v4282_v61 = vld [vmem:[%s4563_s25 + $0x1e8] sm:$0xff]   ;;  %v4286_v3 = vld [vmem:[%s4563_s25 + $0x1e0] sm:$0xff]  }
  0x1e   : > { %v4279_v56 = vld [vmem:[%s4563_s25 + $0x130] sm:$0xff]   ;;  %v4283_v63 = vld [vmem:[%s4563_s25 + $0x128] sm:$0xff]   ;;  %v4287_v4 = vld [vmem:[%s4563_s25 + $0x120] sm:$0xff]  }
  0x1f   : > { %3792 = vmatpush3.bf16.msra.mxu0 %v4255_v20  ;;  %v4280_v57 = vld [vmem:[%s4563_s25 + $0x1b0] sm:$0xff]   ;;  %v4284_v1 = vld [vmem:[%s4563_s25 + $0x1a8] sm:$0xff]   ;;  %v4288_v5 = vld [vmem:[%s4563_s25 + $0x1a0] sm:$0xff]  }
  0x20   : > { %3820 = vmatpush3.bf16.msra.mxu1 %v4256_v21  ;;  %3793 = vmatprep.subr.bf16.mxu0 %v4257_v22  ;;  %v4289_v6 = vld [vmem:[%s4563_s25 + $0x158] sm:$0xff]   ;;  %v4293_v10 = vld [vmem:[%s4563_s25 + $0x150] sm:$0xff]   ;;  %v4297_v14 = vld [vmem:[%s4563_s25 + $0x148] sm:$0xff]  }
  0x21   : > { %3821 = vmatprep.subr.bf16.mxu1 %v4258_v23  ;;  %v4290_v7 = vld [vmem:[%s4563_s25 + $0x1d8] sm:$0xff]   ;;  %v4294_v11 = vld [vmem:[%s4563_s25 + $0x1d0] sm:$0xff]   ;;  %v4298_v15 = vld [vmem:[%s4563_s25 + $0x1c8] sm:$0xff]  }
  0x22   : > { %v4291_v8 = vld [vmem:[%s4563_s25 + $0x118] sm:$0xff]   ;;  %v4295_v12 = vld [vmem:[%s4563_s25 + $0x110] sm:$0xff]   ;;  %v4299_v16 = vld [vmem:[%s4563_s25 + $0x108] sm:$0xff]  }
  0x23   : > { %3794 = vmatpush3.bf16.msra.mxu0 %v4259_v24  ;;  %v4292_v9 = vld [vmem:[%s4563_s25 + $0x198] sm:$0xff]   ;;  %v4296_v13 = vld [vmem:[%s4563_s25 + $0x190] sm:$0xff]   ;;  %v4300_v17 = vld [vmem:[%s4563_s25 + $0x188] sm:$0xff]  }
  0x24   : > { %3822 = vmatpush3.bf16.msra.mxu1 %v4260_v25  ;;  %3795 = vmatprep.subr.bf16.mxu0 %v4261_v26  ;;  %v4301_v18 = vld [vmem:[%s4563_s25 + $0x140] sm:$0xff]   ;;  %v206_v19 = vld [vmem:[%s5259_s0 + $0x110] sm:$0xff]  ;;  %v207_v22 = vld [vmem:[%s5259_s0 + $0x118] sm:$0xff]  ;;  %v3465_v26 = vcombine.low %v4621_v51, %v4626_v52 }
  0x25   : > { %3823 = vmatprep.subr.bf16.mxu1 %v4262_v27  ;;  %v222_v20 = vld [vmem:[%s5259_s0 + $0x190] sm:$0xff]  ;;  %v4302_v21 = vld [vmem:[%s4563_s25 + $0x1c0] sm:$0xff]   ;;  %v223_v23 = vld [vmem:[%s5259_s0 + $0x198] sm:$0xff]  ;;  %v3467_v27 = vcombine.low %v4632_v54, %v4637_v55 }
  0x26   : > { %v4303_v24 = vld [vmem:[%s4563_s25 + $0x100] sm:$0xff]   ;;  %v4311_v38 = vld [vmem:[%s4563_s25 + $0x230] sm:$0xff]   ;;  %v4321_v51 = vld [vmem:[%s4563_s25 + $0x258] sm:$0xff]  }
  0x27   : > { %3796 = vmatpush3.bf16.msra.mxu0 %v4263_v28  ;;  %v4304_v25 = vld [vmem:[%s4563_s25 + $0x180] sm:$0xff]   ;;  %v4305_v28 = vld [vmem:[%s4563_s25 + $0x278] sm:$0xff]   ;;  %v4312_v39 = vld [vmem:[%s4563_s25 + $0x2b0] sm:$0xff]  }
  0x28   : > { %3824 = vmatpush3.bf16.msra.mxu1 %v4264_v29  ;;  %3797 = vmatprep.subr.bf16.mxu0 %v4265_v30  ;;  %v4306_v29 = vld [vmem:[%s4563_s25 + $0x2f8] sm:$0xff]   ;;  %v3498_v30 = vcombine.high %v206_v19, %v222_v20  ;;  %v4698_v36 = vld [vmem:[%s5259_s0 + $0xa0] sm:$0xff]  ;;  %v4325_v55 = vld [vmem:[%s4563_s25 + $0x250] sm:$0xff]  }
  0x29   : > { %3825 = vmatprep.subr.bf16.mxu1 %v4266_v31  ;;  %v4307_v31 = vld [vmem:[%s4563_s25 + $0x238] sm:$0xff]  }
  0x2a   : > { %v4322_v52 = vld [vmem:[%s4563_s25 + $0x2d8] sm:$0xff]  }
  0x2b   : > { %3798 = vmatpush3.bf16.msra.mxu0 %v4267_v32  ;;  %v3500_v32 = vcombine.high %v207_v22, %v223_v23  ;;  %v4324_v54 = vld [vmem:[%s4563_s25 + $0x298] sm:$0xff]  }
  0x2c   : > { %3826 = vmatpush3.bf16.msra.mxu1 %v4268_v33  ;;  %3799 = vmatprep.subr.bf16.mxu0 %v4269_v34  ;;  %v4308_v33 = vld [vmem:[%s4563_s25 + $0x2b8] sm:$0xff]   ;;  %v4309_v34 = vld [vmem:[%s4563_s25 + $0x270] sm:$0xff]  }
  0x2d   : > { %3827 = vmatprep.subr.bf16.mxu1 %v4270_v37  ;;  %v4310_v37 = vld [vmem:[%s4563_s25 + $0x2f0] sm:$0xff]  }
  0x2f   : > { %3800 = vmatpush3.bf16.msra.mxu0 %v4271_v40  ;;  %v3497_v40 = vcombine.low %v206_v19, %v222_v20  ;;  %v4345_v20 = vld [vmem:[%s4563_s25 + $0x368] sm:$0xff]  }
  0x30   : > { %3828 = vmatpush3.bf16.msra.mxu1 %v4272_v41  ;;  %3841 = vmatprep.subr.bf16.mxu0 %v4273_v44  ;;  %v4313_v41 = vld [vmem:[%s4563_s25 + $0x268] sm:$0xff]   ;;  %v3470_v44 = vcombine.high %v4693_v35, %v4698_v36 }
  0x31   : > { %3869 = vmatprep.subr.bf16.mxu1 %v4274_v45  ;;  %v4315_v45 = vld [vmem:[%s4563_s25 + $0x228] sm:$0xff]  }
  0x32   : > { %2641 = vmatmul.mubr.bf16.vlgmr.msra.gmra.mxu0 %v3461_v42  ;;  %v3499_v42 = vcombine.low %v207_v22, %v223_v23  ;;  %v209_v22 = vld [vmem:[%s5259_s0 + $0x128] sm:$0xff] }
  0x33   : > { %2690 = vmatmul.mubr.bf16.vlgmr.msra.gmra.mxu1 %v3463_v43  ;;  %3842 = vmatpush3.bf16.msra.mxu0 %v4275_v47  ;;  %v4314_v43 = vld [vmem:[%s4563_s25 + $0x2e8] sm:$0xff]   ;;  %v4317_v47 = vld [vmem:[%s4563_s25 + $0x260] sm:$0xff]  }
  0x34   : > { %3870 = vmatpush3.bf16.msra.mxu1 %v4276_v49  ;;  %2648 = vmatprep.mubr.bf16.mxu0 %v3494_v46  ;;  %v4316_v46 = vld [vmem:[%s4563_s25 + $0x2a8] sm:$0xff]   ;;  %v4319_v49 = vld [vmem:[%s4563_s25 + $0x220] sm:$0xff]  }
  0x35   : > { %3843 = vmatprep.subr.bf16.mxu0 %v4277_v50  ;;  %2697 = vmatprep.mubr.bf16.mxu1 %v3496_v48  ;;  %v4318_v48 = vld [vmem:[%s4563_s25 + $0x2e0] sm:$0xff]   ;;  %v225_v23 = vld [vmem:[%s5259_s0 + $0x1a8] sm:$0xff] }
  0x36   : > { %3871 = vmatprep.subr.bf16.mxu1 %v4278_v53  ;;  %v4320_v50 = vld [vmem:[%s4563_s25 + $0x2a0] sm:$0xff]   ;;  %v4323_v53 = vld [vmem:[%s4563_s25 + $0x218] sm:$0xff]  }
  0x37   : > { %3844 = vmatpush3.bf16.msra.mxu0 %v4279_v56  ;;  %v4326_v56 = vld [vmem:[%s4563_s25 + $0x2d0] sm:$0xff]  }
  0x38   : > { %3872 = vmatpush3.bf16.msra.mxu1 %v4280_v57  ;;  %3845 = vmatprep.subr.bf16.mxu0 %v4281_v59  ;;  %v4327_v57 = vld [vmem:[%s4563_s25 + $0x210] sm:$0xff]   ;;  %v4329_v59 = vld [vmem:[%s4563_s25 + $0x248] sm:$0xff]  }
  0x39   : > { %3873 = vmatprep.subr.bf16.mxu1 %v4282_v61  ;;  %v4331_v61 = vld [vmem:[%s4563_s25 + $0x208] sm:$0xff]  }
  0x3a   : > { %2649 = vmatmul.mubr.bf16.gmra.mxu0 %v3493_v58  ;;  %v4328_v58 = vld [vmem:[%s4563_s25 + $0x290] sm:$0xff]  }
  0x3b   : > { %3846 = vmatpush3.bf16.msra.mxu0 %v4283_v63  ;;  %2698 = vmatmul.mubr.bf16.gmra.mxu1 %v3495_v60  ;;  %v4330_v60 = vld [vmem:[%s4563_s25 + $0x2c8] sm:$0xff]   ;;  %v4333_v63 = vld [vmem:[%s4563_s25 + $0x240] sm:$0xff]  }
  0x3c   : > { %3874 = vmatpush3.bf16.msra.mxu1 %v4284_v1  ;;  %2738 = vmatprep.mubr.bf16.mxu0 %v3466_v62  ;;  %v4332_v62 = vld [vmem:[%s4563_s25 + $0x288] sm:$0xff]   ;;  %v4335_v1 = vld [vmem:[%s4563_s25 + $0x200] sm:$0xff]  }
  0x3d   : > { %3847 = vmatprep.subr.bf16.mxu0 %v4285_v2  ;;  %2787 = vmatprep.mubr.bf16.mxu1 %v3468_v0  ;;  %v4334_v0 = vld [vmem:[%s4563_s25 + $0x2c0] sm:$0xff]  }
  0x3e   : > { %3875 = vmatprep.subr.bf16.mxu1 %v4286_v3  ;;  %v4336_v2 = vld [vmem:[%s4563_s25 + $0x280] sm:$0xff]   ;;  %v3469_v3 = vcombine.low %v4693_v35, %v4698_v36  ;;  %v4356_v35 = vld [vmem:[%s4563_s25 + $0x398] sm:$0xff]   ;;  %v4357_v36 = vld [vmem:[%s4563_s25 + $0x350] sm:$0xff]  }
  0x3f   : > { %3848 = vmatpush3.bf16.msra.mxu0 %v4287_v4  ;;  %v177_v4 = vld [vmem:[%s5259_s0 + $0x28] sm:$0xff] }
  0x40   : > { %3876 = vmatpush3.bf16.msra.mxu1 %v4288_v5  ;;  %3849 = vmatprep.subr.bf16.mxu0 %v4289_v6  ;;  %v193_v5 = vld [vmem:[%s5259_s0 + $0xa8] sm:$0xff] }
  0x41   : > { %3877 = vmatprep.subr.bf16.mxu1 %v4290_v7  ;;  %v3471_v6 = vcombine.low %v177_v4, %v193_v5  ;;  %v3472_v7 = vcombine.high %v177_v4, %v193_v5  ;;  %v4377_v4 = vld [vmem:[%s4563_s25 + $0x468] sm:$0xff]  }
  0x42   : > { %v4378_v5 = vld [vmem:[%s4563_s25 + $0x4e8] sm:$0xff]  }
  0x43   : > { %3850 = vmatpush3.bf16.msra.mxu0 %v4291_v8  ;;  %v4337_v8 = vld [vmem:[%s4563_s25 + $0x378] sm:$0xff]  }
  0x44   : > { %3878 = vmatpush3.bf16.msra.mxu1 %v4292_v9  ;;  %3851 = vmatprep.subr.bf16.mxu0 %v4293_v10  ;;  %v4338_v9 = vld [vmem:[%s4563_s25 + $0x3f8] sm:$0xff]  }
  0x45   : > { %3879 = vmatprep.subr.bf16.mxu1 %v4294_v11  ;;  %v4339_v10 = vld [vmem:[%s4563_s25 + $0x338] sm:$0xff]  }
  0x46   : > { %v4340_v11 = vld [vmem:[%s4563_s25 + $0x3b8] sm:$0xff]  }
  0x47   : > { %3852 = vmatpush3.bf16.msra.mxu0 %v4295_v12  ;;  %v4341_v12 = vld [vmem:[%s4563_s25 + $0x370] sm:$0xff]  }
  0x48   : > { %3880 = vmatpush3.bf16.msra.mxu1 %v4296_v13  ;;  %3853 = vmatprep.subr.bf16.mxu0 %v4297_v14  ;;  %v4342_v13 = vld [vmem:[%s4563_s25 + $0x3f0] sm:$0xff]  }
  0x49   : > { %3881 = vmatprep.subr.bf16.mxu1 %v4298_v15  ;;  %v4343_v14 = vld [vmem:[%s4563_s25 + $0x330] sm:$0xff]  }
  0x4a   : > { %v4344_v15 = vld [vmem:[%s4563_s25 + $0x3b0] sm:$0xff]  }
  0x4b   : > { %3854 = vmatpush3.bf16.msra.mxu0 %v4299_v16  ;;  %v208_v16 = vld [vmem:[%s5259_s0 + $0x120] sm:$0xff] }
  0x4c   : > { %3882 = vmatpush3.bf16.msra.mxu1 %v4300_v17  ;;  %3855 = vmatprep.subr.bf16.mxu0 %v4301_v18  ;;  %v224_v17 = vld [vmem:[%s5259_s0 + $0x1a0] sm:$0xff] }
  0x4d   : > { %3883 = vmatprep.subr.bf16.mxu1 %v4302_v21  ;;  %v3502_v18 = vcombine.high %v208_v16, %v224_v17  ;;  %v3501_v19 = vcombine.low %v208_v16, %v224_v17  ;;  %v4346_v21 = vld [vmem:[%s4563_s25 + $0x3e8] sm:$0xff]   ;;  %v4385_v16 = vld [vmem:[%s4563_s25 + $0x458] sm:$0xff]  }
  0x4e   : > { %v4386_v17 = vld [vmem:[%s4563_s25 + $0x4d8] sm:$0xff]  }
  0x4f   : > { %3856 = vmatpush3.bf16.msra.mxu0 %v4303_v24  ;;  %v3504_v24 = vcombine.high %v209_v22, %v225_v23 }
  0x50   : > { %3884 = vmatpush3.bf16.msra.mxu1 %v4304_v25  ;;  %3897 = vmatprep.subr.bf16.mxu0 %v4305_v28  ;;  %v4347_v25 = vld [vmem:[%s4563_s25 + $0x328] sm:$0xff]   ;;  %v4349_v28 = vld [vmem:[%s4563_s25 + $0x360] sm:$0xff]  }
  0x51   : > { %3925 = vmatprep.subr.bf16.mxu1 %v4306_v29  ;;  %v4350_v29 = vld [vmem:[%s4563_s25 + $0x3e0] sm:$0xff]  }
  0x52   : > { %2739 = vmatmul.mubr.bf16.vlgmr.msra.gmra.mxu0 %v3465_v26  ;;  %v3503_v26 = vcombine.low %v209_v22, %v225_v23  ;;  %v4391_v22 = vld [vmem:[%s4563_s25 + $0x410] sm:$0xff]  }
  0x53   : > { %2788 = vmatmul.mubr.bf16.vlgmr.msra.gmra.mxu1 %v3467_v27  ;;  %3898 = vmatpush3.bf16.msra.mxu0 %v4307_v31  ;;  %v4348_v27 = vld [vmem:[%s4563_s25 + $0x3a8] sm:$0xff]   ;;  %v4352_v31 = vld [vmem:[%s4563_s25 + $0x3a0] sm:$0xff]   ;;  %v4392_v23 = vld [vmem:[%s4563_s25 + $0x490] sm:$0xff]  }
  0x54   : > { %3926 = vmatpush3.bf16.msra.mxu1 %v4308_v33  ;;  %2746 = vmatprep.mubr.bf16.mxu0 %v3498_v30  ;;  %v4351_v30 = vld [vmem:[%s4563_s25 + $0x320] sm:$0xff]   ;;  %v4354_v33 = vld [vmem:[%s4563_s25 + $0x3d8] sm:$0xff]  }
  0x55   : > { %3899 = vmatprep.subr.bf16.mxu0 %v4309_v34  ;;  %2795 = vmatprep.mubr.bf16.mxu1 %v3500_v32  ;;  %v4353_v32 = vld [vmem:[%s4563_s25 + $0x358] sm:$0xff]  }
  0x56   : > { %3927 = vmatprep.subr.bf16.mxu1 %v4310_v37  ;;  %v4355_v34 = vld [vmem:[%s4563_s25 + $0x318] sm:$0xff]   ;;  %v4358_v37 = vld [vmem:[%s4563_s25 + $0x3d0] sm:$0xff]  }
  0x57   : > { %3900 = vmatpush3.bf16.msra.mxu0 %v4311_v38  ;;  %v4359_v38 = vld [vmem:[%s4563_s25 + $0x310] sm:$0xff]  }
  0x58   : > { %3928 = vmatpush3.bf16.msra.mxu1 %v4312_v39  ;;  %3901 = vmatprep.subr.bf16.mxu0 %v4313_v41  ;;  %v4360_v39 = vld [vmem:[%s4563_s25 + $0x390] sm:$0xff]   ;;  %v4362_v41 = vld [vmem:[%s4563_s25 + $0x3c8] sm:$0xff]  }
  0x59   : > { %3929 = vmatprep.subr.bf16.mxu1 %v4314_v43  ;;  %v4364_v43 = vld [vmem:[%s4563_s25 + $0x388] sm:$0xff]  }
  0x5a   : > { %2747 = vmatmul.mubr.bf16.gmra.mxu0 %v3497_v40  ;;  %v4361_v40 = vld [vmem:[%s4563_s25 + $0x348] sm:$0xff]  }
  0x5b   : > { %3902 = vmatpush3.bf16.msra.mxu0 %v4315_v45  ;;  %2796 = vmatmul.mubr.bf16.gmra.mxu1 %v3499_v42  ;;  %v4363_v42 = vld [vmem:[%s4563_s25 + $0x308] sm:$0xff]   ;;  %v4366_v45 = vld [vmem:[%s4563_s25 + $0x3c0] sm:$0xff]  }
  0x5c   : > { %3930 = vmatpush3.bf16.msra.mxu1 %v4316_v46  ;;  %2836 = vmatprep.mubr.bf16.mxu0 %v3470_v44  ;;  %v4365_v44 = vld [vmem:[%s4563_s25 + $0x340] sm:$0xff]  }
  0x5d   : > { %3903 = vmatprep.subr.bf16.mxu0 %v4317_v47  ;;  %3931 = vmatprep.subr.bf16.mxu1 %v4318_v48  ;;  %v4367_v46 = vld [vmem:[%s4563_s25 + $0x300] sm:$0xff]   ;;  %v178_v48 = vld [vmem:[%s5259_s0 + $0x30] sm:$0xff] }
  0x5e   : > { %2885 = vmatprep.mubr.bf16.mxu1 %v3472_v7  ;;  %v4368_v47 = vld [vmem:[%s4563_s25 + $0x380] sm:$0xff]   ;;  %v227_v7 = vld [vmem:[%s5259_s0 + $0x1b8] sm:$0xff] }
  0x5f   : > { %3904 = vmatpush3.bf16.msra.mxu0 %v4319_v49  ;;  %v194_v49 = vld [vmem:[%s5259_s0 + $0xb0] sm:$0xff] }
  0x60   : > { %3932 = vmatpush3.bf16.msra.mxu1 %v4320_v50  ;;  %3905 = vmatprep.subr.bf16.mxu0 %v4321_v51  ;;  %v179_v50 = vld [vmem:[%s5259_s0 + $0x38] sm:$0xff]  ;;  %v3473_v51 = vcombine.low %v178_v48, %v194_v49 }
  0x61   : > { %3933 = vmatprep.subr.bf16.mxu1 %v4322_v52  ;;  %v3474_v52 = vcombine.high %v178_v48, %v194_v49  ;;  %v212_v48 = vld [vmem:[%s5259_s0 + $0x140] sm:$0xff] }
  0x62   : > { %v228_v49 = vld [vmem:[%s5259_s0 + $0x1c0] sm:$0xff] }
  0x63   : > { %3906 = vmatpush3.bf16.msra.mxu0 %v4323_v53  ;;  %v195_v53 = vld [vmem:[%s5259_s0 + $0xb8] sm:$0xff] }
  0x64   : > { %3934 = vmatpush3.bf16.msra.mxu1 %v4324_v54  ;;  %3907 = vmatprep.subr.bf16.mxu0 %v4325_v55  ;;  %v3475_v54 = vcombine.low %v179_v50, %v195_v53  ;;  %v3476_v55 = vcombine.high %v179_v50, %v195_v53  ;;  %v3510_v50 = vcombine.high %v212_v48, %v228_v49  ;;  %v4410_v53 = vld [vmem:[%s4563_s25 + $0x5e8] sm:$0xff]  }
  0x65   : > { %3935 = vmatprep.subr.bf16.mxu1 %v4326_v56  ;;  %v4369_v56 = vld [vmem:[%s4563_s25 + $0x478] sm:$0xff]  }
  0x67   : > { %3908 = vmatpush3.bf16.msra.mxu0 %v4327_v57  ;;  %v4370_v57 = vld [vmem:[%s4563_s25 + $0x4f8] sm:$0xff]  }
  0x68   : > { %3936 = vmatpush3.bf16.msra.mxu1 %v4328_v58  ;;  %3909 = vmatprep.subr.bf16.mxu0 %v4329_v59  ;;  %v4371_v58 = vld [vmem:[%s4563_s25 + $0x438] sm:$0xff]  }
  0x69   : > { %3937 = vmatprep.subr.bf16.mxu1 %v4330_v60  ;;  %v4372_v59 = vld [vmem:[%s4563_s25 + $0x4b8] sm:$0xff]   ;;  %v4373_v60 = vld [vmem:[%s4563_s25 + $0x470] sm:$0xff]  }
  0x6b   : > { %3910 = vmatpush3.bf16.msra.mxu0 %v4331_v61  ;;  %v4374_v61 = vld [vmem:[%s4563_s25 + $0x4f0] sm:$0xff]  }
  0x6c   : > { %3938 = vmatpush3.bf16.msra.mxu1 %v4332_v62  ;;  %3911 = vmatprep.subr.bf16.mxu0 %v4333_v63  ;;  %v4375_v62 = vld [vmem:[%s4563_s25 + $0x430] sm:$0xff]  }
  0x6d   : > { %3939 = vmatprep.subr.bf16.mxu1 %v4334_v0  ;;  %v4376_v63 = vld [vmem:[%s4563_s25 + $0x4b0] sm:$0xff]  }
  0x6e   : > { %v210_v0 = vld [vmem:[%s5259_s0 + $0x130] sm:$0xff] }
  0x6f   : > { %3912 = vmatpush3.bf16.msra.mxu0 %v4335_v1  ;;  %v226_v1 = vld [vmem:[%s5259_s0 + $0x1b0] sm:$0xff] }
  0x70   : > { %3940 = vmatpush3.bf16.msra.mxu1 %v4336_v2  ;;  %3953 = vmatprep.subr.bf16.mxu0 %v4337_v8  ;;  %v3506_v2 = vcombine.high %v210_v0, %v226_v1 }
  0x71   : > { %3981 = vmatprep.subr.bf16.mxu1 %v4338_v9  ;;  %v4379_v9 = vld [vmem:[%s4563_s25 + $0x428] sm:$0xff]  }
  0x72   : > { %2837 = vmatmul.mubr.bf16.vlgmr.msra.gmra.mxu0 %v3469_v3  ;;  %v3505_v3 = vcombine.low %v210_v0, %v226_v1  ;;  %v4417_v0 = vld [vmem:[%s4563_s25 + $0x558] sm:$0xff]  }
  0x73   : > { %2886 = vmatmul.mubr.bf16.vlgmr.msra.gmra.mxu1 %v3471_v6  ;;  %3954 = vmatpush3.bf16.msra.mxu0 %v4339_v10  ;;  %v211_v6 = vld [vmem:[%s5259_s0 + $0x138] sm:$0xff] }
  0x74   : > { %3982 = vmatpush3.bf16.msra.mxu1 %v4340_v11  ;;  %3955 = vmatprep.subr.bf16.mxu0 %v4341_v12  ;;  %v3508_v8 = vcombine.high %v211_v6, %v227_v7  ;;  %v3507_v10 = vcombine.low %v211_v6, %v227_v7  ;;  %v4380_v11 = vld [vmem:[%s4563_s25 + $0x4a8] sm:$0xff]   ;;  %v4381_v12 = vld [vmem:[%s4563_s25 + $0x460] sm:$0xff]   ;;  %v4418_v1 = vld [vmem:[%s4563_s25 + $0x5d8] sm:$0xff]  }
  0x75   : > { %3983 = vmatprep.subr.bf16.mxu1 %v4342_v13  ;;  %2844 = vmatprep.mubr.bf16.mxu0 %v3502_v18  ;;  %v4382_v13 = vld [vmem:[%s4563_s25 + $0x4e0] sm:$0xff]   ;;  %v4387_v18 = vld [vmem:[%s4563_s25 + $0x418] sm:$0xff]   ;;  %v4423_v6 = vld [vmem:[%s4563_s25 + $0x510] sm:$0xff]  }
  0x76   : > { %2893 = vmatprep.mubr.bf16.mxu1 %v3504_v24  ;;  %v4393_v24 = vld [vmem:[%s4563_s25 + $0x448] sm:$0xff]   ;;  %v4424_v7 = vld [vmem:[%s4563_s25 + $0x590] sm:$0xff]  }
  0x77   : > { %3956 = vmatpush3.bf16.msra.mxu0 %v4343_v14  ;;  %v4383_v14 = vld [vmem:[%s4563_s25 + $0x420] sm:$0xff]  }
  0x78   : > { %3984 = vmatpush3.bf16.msra.mxu1 %v4344_v15  ;;  %3957 = vmatprep.subr.bf16.mxu0 %v4345_v20  ;;  %v4384_v15 = vld [vmem:[%s4563_s25 + $0x4a0] sm:$0xff]   ;;  %v4389_v20 = vld [vmem:[%s4563_s25 + $0x450] sm:$0xff]  }
  0x79   : > { %3985 = vmatprep.subr.bf16.mxu1 %v4346_v21  ;;  %v4390_v21 = vld [vmem:[%s4563_s25 + $0x4d0] sm:$0xff]  }
  0x7a   : > { %2845 = vmatmul.mubr.bf16.gmra.mxu0 %v3501_v19  ;;  %v4388_v19 = vld [vmem:[%s4563_s25 + $0x498] sm:$0xff]  }
  0x7b   : > { %3958 = vmatpush3.bf16.msra.mxu0 %v4347_v25  ;;  %2894 = vmatmul.mubr.bf16.gmra.mxu1 %v3503_v26  ;;  %v4394_v25 = vld [vmem:[%s4563_s25 + $0x4c8] sm:$0xff]  }
  0x7c   : > { %3986 = vmatpush3.bf16.msra.mxu1 %v4348_v27  ;;  %3959 = vmatprep.subr.bf16.mxu0 %v4349_v28  ;;  %v4395_v26 = vld [vmem:[%s4563_s25 + $0x408] sm:$0xff]   ;;  %v4397_v28 = vld [vmem:[%s4563_s25 + $0x440] sm:$0xff]  }
  0x7d   : > { %3987 = vmatprep.subr.bf16.mxu1 %v4350_v29  ;;  %2934 = vmatprep.mubr.bf16.mxu0 %v3474_v52  ;;  %v4396_v27 = vld [vmem:[%s4563_s25 + $0x488] sm:$0xff]   ;;  %v4398_v29 = vld [vmem:[%s4563_s25 + $0x4c0] sm:$0xff]  }
  0x7e   : > { %2983 = vmatprep.mubr.bf16.mxu1 %v3476_v55  ;;  %v4409_v52 = vld [vmem:[%s4563_s25 + $0x568] sm:$0xff]  }
  0x7f   : > { %3960 = vmatpush3.bf16.msra.mxu0 %v4351_v30  ;;  %v4399_v30 = vld [vmem:[%s4563_s25 + $0x400] sm:$0xff]   ;;  %v229_v55 = vld [vmem:[%s5259_s0 + $0x1c8] sm:$0xff] }
  0x80   : > { %3988 = vmatpush3.bf16.msra.mxu1 %v4352_v31  ;;  %3961 = vmatprep.subr.bf16.mxu0 %v4353_v32  ;;  %v4400_v31 = vld [vmem:[%s4563_s25 + $0x480] sm:$0xff]  }
  0x81   : > { %3989 = vmatprep.subr.bf16.mxu1 %v4354_v33  ;;  %v180_v32 = vld [vmem:[%s5259_s0 + $0x40] sm:$0xff] }
  0x82   : > { %v196_v33 = vld [vmem:[%s5259_s0 + $0xc0] sm:$0xff] }
  0x83   : > { %3962 = vmatpush3.bf16.msra.mxu0 %v4355_v34  ;;  %v181_v34 = vld [vmem:[%s5259_s0 + $0x48] sm:$0xff] }
  0x84   : > { %3990 = vmatpush3.bf16.msra.mxu1 %v4356_v35  ;;  %3963 = vmatprep.subr.bf16.mxu0 %v4357_v36  ;;  %v197_v35 = vld [vmem:[%s5259_s0 + $0xc8] sm:$0xff]  ;;  %v3477_v36 = vcombine.low %v180_v32, %v196_v33 }
  0x85   : > { %3991 = vmatprep.subr.bf16.mxu1 %v4358_v37  ;;  %v3478_v37 = vcombine.high %v180_v32, %v196_v33  ;;  %v214_v32 = vld [vmem:[%s5259_s0 + $0x150] sm:$0xff] }
  0x86   : > { %v230_v33 = vld [vmem:[%s5259_s0 + $0x1d0] sm:$0xff] }
  0x87   : > { %3964 = vmatpush3.bf16.msra.mxu0 %v4359_v38  ;;  %v3479_v38 = vcombine.low %v181_v34, %v197_v35 }
  0x88   : > { %3992 = vmatpush3.bf16.msra.mxu1 %v4360_v39  ;;  %3965 = vmatprep.subr.bf16.mxu0 %v4361_v40  ;;  %v3480_v39 = vcombine.high %v181_v34, %v197_v35  ;;  %v4401_v40 = vld [vmem:[%s4563_s25 + $0x578] sm:$0xff]   ;;  %v3514_v34 = vcombine.high %v214_v32, %v230_v33  ;;  %v3513_v35 = vcombine.low %v214_v32, %v230_v33  ;;  %v4469_v33 = vld [vmem:[%s4563_s25 + $0x770] sm:$0xff]  }
  0x89   : > { %3993 = vmatprep.subr.bf16.mxu1 %v4362_v41  ;;  %v4402_v41 = vld [vmem:[%s4563_s25 + $0x5f8] sm:$0xff]  }
  0x8b   : > { %3966 = vmatpush3.bf16.msra.mxu0 %v4363_v42  ;;  %v4403_v42 = vld [vmem:[%s4563_s25 + $0x538] sm:$0xff]  }
  0x8c   : > { %3994 = vmatpush3.bf16.msra.mxu1 %v4364_v43  ;;  %3967 = vmatprep.subr.bf16.mxu0 %v4365_v44  ;;  %v4404_v43 = vld [vmem:[%s4563_s25 + $0x5b8] sm:$0xff]   ;;  %v4405_v44 = vld [vmem:[%s4563_s25 + $0x570] sm:$0xff]  }
  0x8d   : > { %3995 = vmatprep.subr.bf16.mxu1 %v4366_v45  ;;  %v4406_v45 = vld [vmem:[%s4563_s25 + $0x5f0] sm:$0xff]  }
  0x8f   : > { %3968 = vmatpush3.bf16.msra.mxu0 %v4367_v46  ;;  %v4407_v46 = vld [vmem:[%s4563_s25 + $0x530] sm:$0xff]  }
  0x90   : > { %3996 = vmatpush3.bf16.msra.mxu1 %v4368_v47  ;;  %4009 = vmatprep.subr.bf16.mxu0 %v4369_v56  ;;  %v4408_v47 = vld [vmem:[%s4563_s25 + $0x5b0] sm:$0xff]  }
  0x91   : > { %4037 = vmatprep.subr.bf16.mxu1 %v4370_v57  ;;  %v4411_v57 = vld [vmem:[%s4563_s25 + $0x528] sm:$0xff]  }
  0x92   : > { %2935 = vmatmul.mubr.bf16.vlgmr.msra.gmra.mxu0 %v3473_v51  ;;  %v3509_v51 = vcombine.low %v212_v48, %v228_v49  ;;  %v4449_v48 = vld [vmem:[%s4563_s25 + $0x658] sm:$0xff]  }
  0x93   : > { %2984 = vmatmul.mubr.bf16.vlgmr.msra.gmra.mxu1 %v3475_v54  ;;  %4010 = vmatpush3.bf16.msra.mxu0 %v4371_v58  ;;  %v213_v54 = vld [vmem:[%s5259_s0 + $0x148] sm:$0xff]  ;;  %v4450_v49 = vld [vmem:[%s4563_s25 + $0x6d8] sm:$0xff]  }
  0x94   : > { %4038 = vmatpush3.bf16.msra.mxu1 %v4372_v59  ;;  %4011 = vmatprep.subr.bf16.mxu0 %v4373_v60  ;;  %v3512_v56 = vcombine.high %v213_v54, %v229_v55  ;;  %v3511_v58 = vcombine.low %v213_v54, %v229_v55  ;;  %v4412_v59 = vld [vmem:[%s4563_s25 + $0x5a8] sm:$0xff]   ;;  %v4413_v60 = vld [vmem:[%s4563_s25 + $0x560] sm:$0xff]   ;;  %v4455_v54 = vld [vmem:[%s4563_s25 + $0x610] sm:$0xff]  }
  0x95   : > { %4039 = vmatprep.subr.bf16.mxu1 %v4374_v61  ;;  %2942 = vmatprep.mubr.bf16.mxu0 %v3506_v2  ;;  %v4414_v61 = vld [vmem:[%s4563_s25 + $0x5e0] sm:$0xff]   ;;  %v4419_v2 = vld [vmem:[%s4563_s25 + $0x518] sm:$0xff]   ;;  %v4456_v55 = vld [vmem:[%s4563_s25 + $0x690] sm:$0xff]  }
  0x96   : > { %2991 = vmatprep.mubr.bf16.mxu1 %v3508_v8  ;;  %v4425_v8 = vld [vmem:[%s4563_s25 + $0x548] sm:$0xff]  }
  0x97   : > { %4012 = vmatpush3.bf16.msra.mxu0 %v4375_v62  ;;  %v4415_v62 = vld [vmem:[%s4563_s25 + $0x520] sm:$0xff]  }
  0x98   : > { %4040 = vmatpush3.bf16.msra.mxu1 %v4376_v63  ;;  %4013 = vmatprep.subr.bf16.mxu0 %v4377_v4  ;;  %v4416_v63 = vld [vmem:[%s4563_s25 + $0x5a0] sm:$0xff]   ;;  %v4421_v4 = vld [vmem:[%s4563_s25 + $0x550] sm:$0xff]  }
  0x99   : > { %4041 = vmatprep.subr.bf16.mxu1 %v4378_v5  ;;  %v4422_v5 = vld [vmem:[%s4563_s25 + $0x5d0] sm:$0xff]  }
  0x9a   : > { %2943 = vmatmul.mubr.bf16.gmra.mxu0 %v3505_v3  ;;  %v4420_v3 = vld [vmem:[%s4563_s25 + $0x598] sm:$0xff]  }
  0x9b   : > { %4014 = vmatpush3.bf16.msra.mxu0 %v4379_v9  ;;  %2992 = vmatmul.mubr.bf16.gmra.mxu1 %v3507_v10  ;;  %v4426_v9 = vld [vmem:[%s4563_s25 + $0x5c8] sm:$0xff]  }
  0x9c   : > { %4042 = vmatpush3.bf16.msra.mxu1 %v4380_v11  ;;  %4015 = vmatprep.subr.bf16.mxu0 %v4381_v12  ;;  %v4427_v10 = vld [vmem:[%s4563_s25 + $0x508] sm:$0xff]   ;;  %v4429_v12 = vld [vmem:[%s4563_s25 + $0x540] sm:$0xff]  }
  0x9d   : > { %4043 = vmatprep.subr.bf16.mxu1 %v4382_v13  ;;  %3032 = vmatprep.mubr.bf16.mxu0 %v3478_v37  ;;  %v4428_v11 = vld [vmem:[%s4563_s25 + $0x588] sm:$0xff]   ;;  %v4430_v13 = vld [vmem:[%s4563_s25 + $0x5c0] sm:$0xff]  }
  0x9e   : > { %3081 = vmatprep.mubr.bf16.mxu1 %v3480_v39  ;;  %v4442_v37 = vld [vmem:[%s4563_s25 + $0x6e8] sm:$0xff]   ;;  %v231_v39 = vld [vmem:[%s5259_s0 + $0x1d8] sm:$0xff] }
  0x9f   : > { %4016 = vmatpush3.bf16.msra.mxu0 %v4383_v14  ;;  %v4431_v14 = vld [vmem:[%s4563_s25 + $0x500] sm:$0xff]  }
  0xa0   : > { %4044 = vmatpush3.bf16.msra.mxu1 %v4384_v15  ;;  %4017 = vmatprep.subr.bf16.mxu0 %v4385_v16  ;;  %v4432_v15 = vld [vmem:[%s4563_s25 + $0x580] sm:$0xff]   ;;  %v182_v16 = vld [vmem:[%s5259_s0 + $0x50] sm:$0xff] }
  0xa1   : > { %4045 = vmatprep.subr.bf16.mxu1 %v4386_v17  ;;  %v198_v17 = vld [vmem:[%s5259_s0 + $0xd0] sm:$0xff] }
  0xa3   : > { %4018 = vmatpush3.bf16.msra.mxu0 %v4387_v18  ;;  %v3481_v18 = vcombine.low %v182_v16, %v198_v17 }
  0xa4   : > { %4046 = vmatpush3.bf16.msra.mxu1 %v4388_v19  ;;  %4019 = vmatprep.subr.bf16.mxu0 %v4389_v20  ;;  %v3482_v19 = vcombine.high %v182_v16, %v198_v17  ;;  %v183_v20 = vld [vmem:[%s5259_s0 + $0x58] sm:$0xff]  ;;  %v201_v16 = vld [vmem:[%s5259_s0 + $0xe8] sm:$0xff] }
  0xa5   : > { %4047 = vmatprep.subr.bf16.mxu1 %v4390_v21  ;;  %v199_v21 = vld [vmem:[%s5259_s0 + $0xd8] sm:$0xff] }
  0xa7   : > { %4020 = vmatpush3.bf16.msra.mxu0 %v4391_v22  ;;  %v3483_v22 = vcombine.low %v183_v20, %v199_v21 }
  0xa8   : > { %4048 = vmatpush3.bf16.msra.mxu1 %v4392_v23  ;;  %4021 = vmatprep.subr.bf16.mxu0 %v4393_v24  ;;  %v3484_v23 = vcombine.high %v183_v20, %v199_v21  ;;  %v4433_v24 = vld [vmem:[%s4563_s25 + $0x678] sm:$0xff]  }
  0xa9   : > { %4049 = vmatprep.subr.bf16.mxu1 %v4394_v25  ;;  %v4434_v25 = vld [vmem:[%s4563_s25 + $0x6f8] sm:$0xff]  }
  0xaa   : > { %v4465_v21 = vld [vmem:[%s4563_s25 + $0x778] sm:$0xff]  }
  0xab   : > { %4022 = vmatpush3.bf16.msra.mxu0 %v4395_v26  ;;  %v4435_v26 = vld [vmem:[%s4563_s25 + $0x638] sm:$0xff]  }
  0xac   : > { %4050 = vmatpush3.bf16.msra.mxu1 %v4396_v27  ;;  %4023 = vmatprep.subr.bf16.mxu0 %v4397_v28  ;;  %v4436_v27 = vld [vmem:[%s4563_s25 + $0x6b8] sm:$0xff]   ;;  %v4437_v28 = vld [vmem:[%s4563_s25 + $0x670] sm:$0xff]  }
  0xad   : > { %4051 = vmatprep.subr.bf16.mxu1 %v4398_v29  ;;  %v4438_v29 = vld [vmem:[%s4563_s25 + $0x6f0] sm:$0xff]  }
  0xaf   : > { %4024 = vmatpush3.bf16.msra.mxu0 %v4399_v30  ;;  %v4439_v30 = vld [vmem:[%s4563_s25 + $0x630] sm:$0xff]  }
  0xb0   : > { %4052 = vmatpush3.bf16.msra.mxu1 %v4400_v31  ;;  %4065 = vmatprep.subr.bf16.mxu0 %v4401_v40  ;;  %v4440_v31 = vld [vmem:[%s4563_s25 + $0x6b0] sm:$0xff]  }
  0xb1   : > { %4093 = vmatprep.subr.bf16.mxu1 %v4402_v41  ;;  %v4443_v41 = vld [vmem:[%s4563_s25 + $0x628] sm:$0xff]  }
  0xb2   : > { %3033 = vmatmul.mubr.bf16.vlgmr.msra.gmra.mxu0 %v3477_v36  ;;  %v4441_v36 = vld [vmem:[%s4563_s25 + $0x668] sm:$0xff]  }
  0xb3   : > { %3082 = vmatmul.mubr.bf16.vlgmr.msra.gmra.mxu1 %v3479_v38  ;;  %4066 = vmatpush3.bf16.msra.mxu0 %v4403_v42  ;;  %v215_v38 = vld [vmem:[%s5259_s0 + $0x158] sm:$0xff] }
  0xb4   : > { %4094 = vmatpush3.bf16.msra.mxu1 %v4404_v43  ;;  %4067 = vmatprep.subr.bf16.mxu0 %v4405_v44  ;;  %v3516_v40 = vcombine.high %v215_v38, %v231_v39  ;;  %v3515_v42 = vcombine.low %v215_v38, %v231_v39  ;;  %v4444_v43 = vld [vmem:[%s4563_s25 + $0x6a8] sm:$0xff]   ;;  %v4445_v44 = vld [vmem:[%s4563_s25 + $0x660] sm:$0xff]   ;;  %v4471_v38 = vld [vmem:[%s4563_s25 + $0x730] sm:$0xff]  }
  0xb5   : > { %4095 = vmatprep.subr.bf16.mxu1 %v4406_v45  ;;  %3040 = vmatprep.mubr.bf16.mxu0 %v3510_v50  ;;  %v4446_v45 = vld [vmem:[%s4563_s25 + $0x6e0] sm:$0xff]   ;;  %v4451_v50 = vld [vmem:[%s4563_s25 + $0x618] sm:$0xff]  }
  0xb6   : > { %3089 = vmatprep.mubr.bf16.mxu1 %v3512_v56  ;;  %v4457_v56 = vld [vmem:[%s4563_s25 + $0x648] sm:$0xff]  }
  0xb7   : > { %4068 = vmatpush3.bf16.msra.mxu0 %v4407_v46  ;;  %v4447_v46 = vld [vmem:[%s4563_s25 + $0x620] sm:$0xff]  }
  0xb8   : > { %4096 = vmatpush3.bf16.msra.mxu1 %v4408_v47  ;;  %4069 = vmatprep.subr.bf16.mxu0 %v4409_v52  ;;  %v4448_v47 = vld [vmem:[%s4563_s25 + $0x6a0] sm:$0xff]   ;;  %v4453_v52 = vld [vmem:[%s4563_s25 + $0x650] sm:$0xff]  }
  0xb9   : > { %4097 = vmatprep.subr.bf16.mxu1 %v4410_v53  ;;  %v4454_v53 = vld [vmem:[%s4563_s25 + $0x6d0] sm:$0xff]  }
  0xba   : > { %3041 = vmatmul.mubr.bf16.gmra.mxu0 %v3509_v51  ;;  %v4452_v51 = vld [vmem:[%s4563_s25 + $0x698] sm:$0xff]  }
  0xbb   : > { %4070 = vmatpush3.bf16.msra.mxu0 %v4411_v57  ;;  %3090 = vmatmul.mubr.bf16.gmra.mxu1 %v3511_v58  ;;  %v4458_v57 = vld [vmem:[%s4563_s25 + $0x6c8] sm:$0xff]  }
  0xbc   : > { %4098 = vmatpush3.bf16.msra.mxu1 %v4412_v59  ;;  %4071 = vmatprep.subr.bf16.mxu0 %v4413_v60  ;;  %v4459_v59 = vld [vmem:[%s4563_s25 + $0x608] sm:$0xff]  }
  0xbd   : > { %4099 = vmatprep.subr.bf16.mxu1 %v4414_v61  ;;  %3130 = vmatprep.mubr.bf16.mxu0 %v3482_v19  ;;  %v4460_v61 = vld [vmem:[%s4563_s25 + $0x688] sm:$0xff]  }
  0xbe   : > { %3179 = vmatprep.mubr.bf16.mxu1 %v3484_v23  ;;  %v4466_v23 = vld [vmem:[%s4563_s25 + $0x7f8] sm:$0xff]  }
  0xbf   : > { %4072 = vmatpush3.bf16.msra.mxu0 %v4415_v62 }
  0xc0   : > { %4100 = vmatpush3.bf16.msra.mxu1 %v4416_v63  ;;  %4073 = vmatprep.subr.bf16.mxu0 %v4417_v0  ;;  %v4461_v63 = vld [vmem:[%s4563_s25 + $0x640] sm:$0xff]  }
  0xc1   : > { %4101 = vmatprep.subr.bf16.mxu1 %v4418_v1 }
  0xc3   : > { %4074 = vmatpush3.bf16.msra.mxu0 %v4419_v2  ;;  %v4462_v2 = vld [vmem:[%s4563_s25 + $0x6c0] sm:$0xff]  }
  0xc4   : > { %4102 = vmatpush3.bf16.msra.mxu1 %v4420_v3  ;;  %4075 = vmatprep.subr.bf16.mxu0 %v4421_v4 }
  0xc5   : > { %4103 = vmatprep.subr.bf16.mxu1 %v4422_v5  ;;  %v4463_v5 = vld [vmem:[%s4563_s25 + $0x600] sm:$0xff]  }
  0xc7   : > { %4076 = vmatpush3.bf16.msra.mxu0 %v4423_v6 }
  0xc8   : > { %4104 = vmatpush3.bf16.msra.mxu1 %v4424_v7  ;;  %4077 = vmatprep.subr.bf16.mxu0 %v4425_v8  ;;  %v4464_v7 = vld [vmem:[%s4563_s25 + $0x680] sm:$0xff]  }
  0xc9   : > { %4105 = vmatprep.subr.bf16.mxu1 %v4426_v9  ;;  %v184_v9 = vld [vmem:[%s5259_s0 + $0x60] sm:$0xff] }
  0xcb   : > { %4078 = vmatpush3.bf16.msra.mxu0 %v4427_v10  ;;  %v200_v10 = vld [vmem:[%s5259_s0 + $0xe0] sm:$0xff] }
  0xcc   : > { %4106 = vmatpush3.bf16.msra.mxu1 %v4428_v11  ;;  %4079 = vmatprep.subr.bf16.mxu0 %v4429_v12  ;;  %v185_v11 = vld [vmem:[%s5259_s0 + $0x68] sm:$0xff] }
  0xcd   : > { %4107 = vmatprep.subr.bf16.mxu1 %v4430_v13  ;;  %v3487_v19 = vcombine.low %v185_v11, %v201_v16  ;;  %v3488_v20 = vcombine.high %v185_v11, %v201_v16  ;;  %v751_v16 = vld [vmem:[%s5261_s2 + $0x18] sm:$0xff] }
  0xcf   : > { %4080 = vmatpush3.bf16.msra.mxu0 %v4431_v14  ;;  %v3485_v14 = vcombine.low %v184_v9, %v200_v10 }
  0xd0   : > { %4108 = vmatpush3.bf16.msra.mxu1 %v4432_v15  ;;  %4121 = vmatprep.subr.bf16.mxu0 %v4433_v24  ;;  %v3486_v15 = vcombine.high %v184_v9, %v200_v10  ;;  %v4488_v9 = vld [vmem:[%s4563_s25 + $0x790] sm:$0xff]  }
  0xd1   : > { %4149 = vmatprep.subr.bf16.mxu1 %v4434_v25  ;;  %v4467_v25 = vld [vmem:[%s4563_s25 + $0x738] sm:$0xff]  }
  0xd2   : > { %3131 = vmatmul.mubr.bf16.vlgmr.msra.gmra.mxu0 %v3481_v18 }
  0xd3   : > { %3180 = vmatmul.mubr.bf16.vlgmr.msra.gmra.mxu1 %v3483_v22  ;;  %4122 = vmatpush3.bf16.msra.mxu0 %v4435_v26 }
  0xd4   : > { %4150 = vmatpush3.bf16.msra.mxu1 %v4436_v27  ;;  %4123 = vmatprep.subr.bf16.mxu0 %v4437_v28  ;;  %v4468_v28 = vld [vmem:[%s4563_s25 + $0x7b8] sm:$0xff]  }
  0xd5   : > { %4151 = vmatprep.subr.bf16.mxu1 %v4438_v29  ;;  %3138 = vmatprep.mubr.bf16.mxu0 %v3514_v34  ;;  %v748_v29 = vld [vmem:[%s5261_s2] sm:$0xff] }
  0xd6   : > { %3187 = vmatprep.mubr.bf16.mxu1 %v3516_v40 }
  0xd7   : > { %4124 = vmatpush3.bf16.msra.mxu0 %v4439_v30 }
  0xd8   : > { %4152 = vmatpush3.bf16.msra.mxu1 %v4440_v31  ;;  %4125 = vmatprep.subr.bf16.mxu0 %v4441_v36 }
  0xd9   : > { %4153 = vmatprep.subr.bf16.mxu1 %v4442_v37 }
  0xda   : > { %3139 = vmatmul.mubr.bf16.gmra.mxu0 %v3513_v35  ;;  %v4470_v35 = vld [vmem:[%s4563_s25 + $0x7f0] sm:$0xff]  }
  0xdb   : > { %4126 = vmatpush3.bf16.msra.mxu0 %v4443_v41  ;;  %3188 = vmatmul.mubr.bf16.gmra.mxu1 %v3515_v42  ;;  %v4472_v41 = vld [vmem:[%s4563_s25 + $0x7b0] sm:$0xff]   ;;  %v749_v42 = vld [vmem:[%s5261_s2 + $0x8] sm:$0xff] }
  0xdc   : > { %4154 = vmatpush3.bf16.msra.mxu1 %v4444_v43  ;;  %4127 = vmatprep.subr.bf16.mxu0 %v4445_v44 }
  0xdd   : > { %4155 = vmatprep.subr.bf16.mxu1 %v4446_v45  ;;  %3228 = vmatprep.mubr.bf16.mxu0 %v3486_v15  ;;  %v216_v45 = vld [vmem:[%s5259_s0 + $0x160] sm:$0xff]  ;;  %v4490_v15 = vld [vmem:[%s4563_s25 + $0x7c8] sm:$0xff]  }
  0xde   : > { %3277 = vmatprep.mubr.bf16.mxu1 %v3488_v20  ;;  %v4491_v20 = vld [vmem:[%s4563_s25 + $0x708] sm:$0xff]  }
  0xdf   : > { %4128 = vmatpush3.bf16.msra.mxu0 %v4447_v46  ;;  %v232_v46 = vld [vmem:[%s5259_s0 + $0x1e0] sm:$0xff] }
  0xe0   : > { %4156 = vmatpush3.bf16.msra.mxu1 %v4448_v47  ;;  %4129 = vmatprep.subr.bf16.mxu0 %v4449_v48  ;;  %v3518_v47 = vcombine.high %v216_v45, %v232_v46  ;;  %v3517_v48 = vcombine.low %v216_v45, %v232_v46  ;;  %v203_v46 = vld [vmem:[%s5259_s0 + $0xf8] sm:$0xff] }
  0xe1   : > { %4157 = vmatprep.subr.bf16.mxu1 %v4450_v49  ;;  %v4473_v49 = vld [vmem:[%s4563_s25 + $0x768] sm:$0xff]  }
  0xe3   : > { %4130 = vmatpush3.bf16.msra.mxu0 %v4451_v50 }
  0xe4   : > { %4158 = vmatpush3.bf16.msra.mxu1 %v4452_v51  ;;  %4131 = vmatprep.subr.bf16.mxu0 %v4453_v52  ;;  %v4474_v51 = vld [vmem:[%s4563_s25 + $0x7e8] sm:$0xff]  }
  0xe5   : > { %4159 = vmatprep.subr.bf16.mxu1 %v4454_v53  ;;  %v217_v52 = vld [vmem:[%s5259_s0 + $0x168] sm:$0xff] }
  0xe6   : > { %v233_v53 = vld [vmem:[%s5259_s0 + $0x1e8] sm:$0xff] }
  0xe7   : > { %4132 = vmatpush3.bf16.msra.mxu0 %v4455_v54  ;;  %v3520_v54 = vcombine.high %v217_v52, %v233_v53 }
  0xe8   : > { %4160 = vmatpush3.bf16.msra.mxu1 %v4456_v55  ;;  %4133 = vmatprep.subr.bf16.mxu0 %v4457_v56  ;;  %v4475_v55 = vld [vmem:[%s4563_s25 + $0x728] sm:$0xff]   ;;  %v3519_v56 = vcombine.low %v217_v52, %v233_v53 }
  0xe9   : > { %4161 = vmatprep.subr.bf16.mxu1 %v4458_v57  ;;  %v4476_v57 = vld [vmem:[%s4563_s25 + $0x7a8] sm:$0xff]  }
  0xeb   : > { %4134 = vmatpush3.bf16.msra.mxu0 %v4459_v59  ;;  %v4478_v59 = vld [vmem:[%s4563_s25 + $0x7e0] sm:$0xff]  }
  0xec   : > { %4162 = vmatpush3.bf16.msra.mxu1 %v4460_v61  ;;  %4135 = vmatprep.subr.bf16.mxu0 %v4461_v63  ;;  %v4480_v61 = vld [vmem:[%s4563_s25 + $0x7a0] sm:$0xff]   ;;  %v4482_v63 = vld [vmem:[%s4563_s25 + $0x7d8] sm:$0xff]  }
  0xed   : > { %4163 = vmatprep.subr.bf16.mxu1 %v4462_v2  ;;  %v4485_v2 = vld [vmem:[%s4563_s25 + $0x750] sm:$0xff]  }
  0xef   : > { %4136 = vmatpush3.bf16.msra.mxu0 %v4463_v5 }
  0xf0   : > { %4164 = vmatpush3.bf16.msra.mxu1 %v4464_v7  ;;  %4177 = vmatprep.subr.bf16.mxu0 %v4465_v21  ;;  %v4487_v7 = vld [vmem:[%s4563_s25 + $0x710] sm:$0xff]  }
  0xf1   : > { %4205 = vmatprep.subr.bf16.mxu1 %v4466_v23  ;;  %v4492_v23 = vld [vmem:[%s4563_s25 + $0x788] sm:$0xff]  }
  0xf2   : > { %v3801_v58 = vpop.f32.mrf.mxu0  ;;  %3229 = vmatmul.mubr.bf16.vlgmr.msra.gmra.mxu0 %v3485_v14 }
  0xf3   : > { %v3829_v60 = vpop.f32.mrf.mxu1  ;;  %3278 = vmatmul.mubr.bf16.vlgmr.msra.gmra.mxu1 %v3487_v19  ;;  %4178 = vmatpush3.bf16.msra.mxu0 %v4467_v25 }
  0xf4   : > { %v3802_v62 = vpop.f32.mrf.mxu0  ;;  %4206 = vmatpush3.bf16.msra.mxu1 %v4468_v28  ;;  %4179 = vmatprep.subr.bf16.mxu0 %v4469_v33  ;;  %v4495_v33 = vld [vmem:[%s4563_s25 + $0x700] sm:$0xff]  }
  0xf5   : > { %v3803_v0 = vadd.f32 %v3802_v62, %v3801_v58  ;;  %v3830_v1 = vpop.f32.mrf.mxu1  ;;  %4207 = vmatprep.subr.bf16.mxu1 %v4470_v35  ;;  %3236 = vmatprep.mubr.bf16.mxu0 %v3518_v47  ;;  %v4477_v58 = vld [vmem:[%s4563_s25 + $0x760] sm:$0xff]   ;;  %v4481_v62 = vld [vmem:[%s4563_s25 + $0x758] sm:$0xff]   ;;  %v218_v47 = vld [vmem:[%s5259_s0 + $0x170] sm:$0xff] }
  0xf6   : > { %v3831_v3 = vadd.f32 %v3830_v1, %v3829_v60  ;;  %v3804_v4 = vpop.f32.mrf.mxu0  ;;  %3285 = vmatprep.mubr.bf16.mxu1 %v3520_v54  ;;  %v4479_v60 = vld [vmem:[%s4563_s25 + $0x720] sm:$0xff]   ;;  %v4484_v1 = vld [vmem:[%s4563_s25 + $0x798] sm:$0xff]  }
  0xf7   : > { %v3832_v6 = vpop.f32.mrf.mxu1  ;;  %v2643_v32 = vadd.f32 %v3803_v0, %v748_v29  ;;  %4180 = vmatpush3.bf16.msra.mxu0 %v4471_v38  ;;  %v4483_v0 = vld [vmem:[%s4563_s25 + $0x718] sm:$0xff]   ;;  %v186_v38 = vld [vmem:[%s5259_s0 + $0x70] sm:$0xff] }
  0xf8   : > { %v3805_v8 = vpop.f32.mrf.mxu0  ;;  %4208 = vmatpush3.bf16.msra.mxu1 %v4472_v41  ;;  %4181 = vmatprep.subr.bf16.mxu0 %v4473_v49  ;;  %v219_v54 = vld [vmem:[%s5259_s0 + $0x178] sm:$0xff] }
  0xf9   : > { %v3806_v12 = vadd.f32 %v3805_v8, %v3804_v4  ;;  %v3833_v13 = vpop.f32.mrf.mxu1  ;;  %v4974_v37 = vadd.f32 %v3831_v3, %v2643_v32  ;;  %4209 = vmatprep.subr.bf16.mxu1 %v4474_v51  ;;  %v4486_v3 = vld [vmem:[%s4563_s25 + $0x7d0] sm:$0xff]  }
  0xfa   : > { %v3834_v17 = vadd.f32 %v3833_v13, %v3832_v6  ;;  %v3807_v18 = vpop.f32.mrf.mxu0  ;;  %3237 = vmatmul.mubr.bf16.gmra.mxu0 %v3517_v48  ;;  %v750_v4 = vld [vmem:[%s5261_s2 + $0x10] sm:$0xff] }
  0xfb   : > { %v3835_v22 = vpop.f32.mrf.mxu1  ;;  %v2646_v44 = vadd.f32 %v3806_v12, %v749_v42  ;;  %4182 = vmatpush3.bf16.msra.mxu0 %v4475_v55  ;;  %3286 = vmatmul.mubr.bf16.gmra.mxu1 %v3519_v56  ;;  %v4489_v12 = vld [vmem:[%s4563_s25 + $0x748] sm:$0xff]   ;;  %v234_v48 = vld [vmem:[%s5259_s0 + $0x1f0] sm:$0xff]  ;;  %v235_v55 = vld [vmem:[%s5259_s0 + $0x1f8] sm:$0xff] }
  0xfc   : > { %v3808_v24 = vpop.f32.mrf.mxu0  ;;  %4210 = vmatpush3.bf16.msra.mxu1 %v4476_v57  ;;  %4183 = vmatprep.subr.bf16.mxu0 %v4477_v58  ;;  %v3522_v53 = vcombine.high %v218_v47, %v234_v48  ;;  %v3524_v57 = vcombine.high %v219_v54, %v235_v55 }
  0xfd   : > { %v4964_v26 = vadd.f32 %v3808_v24, %v3807_v18  ;;  %v3836_v27 = vpop.f32.mrf.mxu1  ;;  %v4992_v50 = vadd.f32 %v3834_v17, %v2646_v44  ;;  %4211 = vmatprep.subr.bf16.mxu1 %v4478_v59 }
  0xfe   : > { %v3810_v30 = vpop.f32.mrf.mxu0  ;;  %v4970_v31 = vadd.f32 %v3836_v27, %v3835_v22 }
  0xff   : > { %v3838_v34 = vpop.f32.mrf.mxu1  ;;  %4184 = vmatpush3.bf16.msra.mxu0 %v4479_v60  ;;  %v2651_v6 = vadd.f32 %v4964_v26, %v750_v4  ;;  %v4493_v26 = vld [vmem:[%s4563_s25 + $0x740] sm:$0xff]  }
 0x100   : > { %v3811_v36 = vpop.f32.mrf.mxu0  ;;  %4212 = vmatpush3.bf16.msra.mxu1 %v4480_v61  ;;  %4185 = vmatprep.subr.bf16.mxu0 %v4481_v62 }
 0x101   : > { %v4977_v39 = vadd.f32 %v3811_v36, %v3810_v30  ;;  %v3839_v40 = vpop.f32.mrf.mxu1  ;;  %4213 = vmatprep.subr.bf16.mxu1 %v4482_v63  ;;  %v2700_v11 = vadd.f32 %v4970_v31, %v2651_v6  ;;  %v4494_v30 = vld [vmem:[%s4563_s25 + $0x7c0] sm:$0xff]  }
 0x102   : > { %v4983_v43 = vadd.f32 %v3839_v40, %v3838_v34  ;;  %v4496_v36 = vld [vmem:[%s4563_s25 + $0x780] sm:$0xff]   ;;  %v187_v40 = vld [vmem:[%s5259_s0 + $0x78] sm:$0xff] }
 0x103   : > { %4186 = vmatpush3.bf16.msra.mxu0 %v4483_v0  ;;  %v2654_v19 = vadd.f32 %v4977_v39, %v751_v16  ;;  %v202_v39 = vld [vmem:[%s5259_s0 + $0xf0] sm:$0xff]  ;;  %v3491_v51 = vcombine.low %v187_v40, %v203_v46  ;;  %v3492_v52 = vcombine.high %v187_v40, %v203_v46 }
 0x104   : > { %4214 = vmatpush3.bf16.msra.mxu1 %v4484_v1  ;;  %4187 = vmatprep.subr.bf16.mxu0 %v4485_v2  ;;  %v3489_v44 = vcombine.low %v186_v38, %v202_v39  ;;  %v3490_v45 = vcombine.high %v186_v38, %v202_v39  ;;  %v3521_v1 = vcombine.low %v218_v47, %v234_v48 }
 0x105   : > { %4215 = vmatprep.subr.bf16.mxu1 %v4486_v3  ;;  %v2703_v25 = vadd.f32 %v4983_v43, %v2654_v19  ;;  %3375 = vmatprep.mubr.bf16.mxu1 %v3492_v52  ;;  %v3523_v3 = vcombine.low %v219_v54, %v235_v55 }
 0x106   : > { %3326 = vmatprep.mubr.bf16.mxu0 %v3490_v45 }
 0x107   : > { %4188 = vmatpush3.bf16.msra.mxu0 %v4487_v7 }
 0x108   : > { %4216 = vmatpush3.bf16.msra.mxu1 %v4488_v9  ;;  %4189 = vmatprep.subr.bf16.mxu0 %v4489_v12 }
 0x109   : > { %4217 = vmatprep.subr.bf16.mxu1 %v4490_v15 }
 0x10b   : > { %4190 = vmatpush3.bf16.msra.mxu0 %v4491_v20 }
 0x10c   : > { %4218 = vmatpush3.bf16.msra.mxu1 %v4492_v23  ;;  %4191 = vmatprep.subr.bf16.mxu0 %v4493_v26 }
 0x10d   : > { %4219 = vmatprep.subr.bf16.mxu1 %v4494_v30 }
 0x10f   : > { %4192 = vmatpush3.bf16.msra.mxu0 %v4495_v33 }
 0x110   : > { %4220 = vmatpush3.bf16.msra.mxu1 %v4496_v36 }
 0x112   : > { %v3857_v5 = vpop.f32.mrf.mxu0  ;;  %3327 = vmatmul.mubr.bf16.vlgmr.msra.gmra.mxu0 %v3489_v44 }
 0x113   : > { %v3885_v8 = vpop.f32.mrf.mxu1  ;;  %3376 = vmatmul.mubr.bf16.vlgmr.msra.gmra.mxu1 %v3491_v51  ;;  %3334 = vmatprep.mubr.bf16.mxu0 %v3522_v53 }
 0x114   : > { %v3858_v10 = vpop.f32.mrf.mxu0  ;;  %3383 = vmatprep.mubr.bf16.mxu1 %v3524_v57 }
 0x115   : > { %v3859_v13 = vadd.f32 %v3858_v10, %v3857_v5  ;;  %v3886_v14 = vpop.f32.mrf.mxu1 }
 0x116   : > { %v3887_v17 = vadd.f32 %v3886_v14, %v3885_v8  ;;  %v3860_v18 = vpop.f32.mrf.mxu0 }
 0x117   : > { %v2741_v21 = vadd.f32 %v3859_v13, %v4974_v37  ;;  %v3888_v22 = vpop.f32.mrf.mxu1 }
 0x118   : > { %v3861_v24 = vpop.f32.mrf.mxu0 }
 0x119   : > { %v5031_v27 = vadd.f32 %v3887_v17, %v2741_v21  ;;  %v3862_v28 = vadd.f32 %v3861_v24, %v3860_v18  ;;  %v3889_v29 = vpop.f32.mrf.mxu1 }
 0x11a   : > { %v3890_v31 = vadd.f32 %v3889_v29, %v3888_v22  ;;  %v3863_v32 = vpop.f32.mrf.mxu0  ;;  %3335 = vmatmul.mubr.bf16.gmra.mxu0 %v3521_v1 }
 0x11b   : > { %v2744_v34 = vadd.f32 %v3862_v28, %v4992_v50  ;;  %v3891_v35 = vpop.f32.mrf.mxu1  ;;  %3384 = vmatmul.mubr.bf16.gmra.mxu1 %v3523_v3 }
 0x11c   : > { %v3864_v37 = vpop.f32.mrf.mxu0 }
 0x11d   : > { %v5046_v41 = vadd.f32 %v3890_v31, %v2744_v34  ;;  %v3865_v42 = vadd.f32 %v3864_v37, %v3863_v32  ;;  %v3892_v43 = vpop.f32.mrf.mxu1 }
 0x11e   : > { %v3866_v49 = vpop.f32.mrf.mxu0  ;;  %v3893_v50 = vadd.f32 %v3892_v43, %v3891_v35 }
 0x11f   : > { %v3894_v56 = vpop.f32.mrf.mxu1  ;;  %v2749_v58 = vadd.f32 %v3865_v42, %v2700_v11 }
 0x120   : > { %v3867_v59 = vpop.f32.mrf.mxu0 }
 0x121   : > { %v3868_v60 = vadd.f32 %v3867_v59, %v3866_v49  ;;  %v3895_v61 = vpop.f32.mrf.mxu1  ;;  %v5063_v62 = vadd.f32 %v3893_v50, %v2749_v58 }
 0x122   : > { %v3896_v63 = vadd.f32 %v3895_v61, %v3894_v56 }
 0x123   : > { %v2752_v0 = vadd.f32 %v3868_v60, %v2703_v25 }
 0x125   : > { %v5065_v2 = vadd.f32 %v3896_v63, %v2752_v0 }
 0x132   : > { %v5067_v4 = vpop.f32.mrf.mxu0 }
 0x133   : > { %v5073_v7 = vpop.f32.mrf.mxu1 }
 0x134   : > { %v5069_v5 = vpop.f32.mrf.mxu0 }
 0x135   : > { %v5077_v9 = vpop.f32.mrf.mxu1 }
 0x136   : > { %v5071_v6 = vpop.f32.mrf.mxu0 }
 0x137   : > { %v5081_v11 = vpop.f32.mrf.mxu1 }
 0x138   : > { %v5075_v8 = vpop.f32.mrf.mxu0 }
 0x139   : > { %v5085_v13 = vpop.f32.mrf.mxu1 }
 0x13a   : > { %v5079_v10 = vpop.f32.mrf.mxu0 }
 0x13b   : > { %v5089_v15 = vpop.f32.mrf.mxu1 }
 0x13c   : > { %v5083_v12 = vpop.f32.mrf.mxu0 }
 0x13d   : > { %v5093_v17 = vpop.f32.mrf.mxu1 }
 0x13e   : > { %v5087_v14 = vpop.f32.mrf.mxu0 }
 0x13f   : > { %v5095_v19 = vpop.f32.mrf.mxu1 }
 0x140   : > { %v5091_v16 = vpop.f32.mrf.mxu0 }
 0x141   : > { %v5097_v21 = vpop.f32.mrf.mxu1 }
 0x152   : > { %v3969_v18 = vpop.f32.mrf.mxu0 }
 0x153   : > { %v3997_v23 = vpop.f32.mrf.mxu1 }
 0x154   : > { %v3970_v20 = vpop.f32.mrf.mxu0 }
 0x155   : > { %v3998_v25 = vpop.f32.mrf.mxu1 }
 0x156   : > { %v3972_v22 = vpop.f32.mrf.mxu0 }
 0x157   : > { %v5101_v28 = vpop.f32.mrf.mxu1 }
 0x158   : > { %v3973_v24 = vpop.f32.mrf.mxu0 }
 0x159   : > { %v5105_v30 = vpop.f32.mrf.mxu1 }
 0x15a   : > { %v5099_v26 = vpop.f32.mrf.mxu0 }
 0x15b   : > { %v5107_v31 = vpop.f32.mrf.mxu1 }
 0x15c   : > { %v5103_v29 = vpop.f32.mrf.mxu0 }
 0x15d   : > { %v5111_v33 = vpop.f32.mrf.mxu1 }
 0x15e   : > { %v5109_v32 = vpop.f32.mrf.mxu0 }
 0x15f   : > { %v5115_v36 = vpop.f32.mrf.mxu1 }
 0x160   : > { %v5113_v34 = vpop.f32.mrf.mxu0 }
 0x161   : > { %v5117_v38 = vpop.f32.mrf.mxu1 }
 0x172   : > { %v4025_v35 = vpop.f32.mrf.mxu0 }
 0x173   : > { %v5119_v39 = vpop.f32.mrf.mxu1 }
 0x174   : > { %v4026_v37 = vpop.f32.mrf.mxu0 }
 0x175   : > { %v4054_v42 = vpop.f32.mrf.mxu1 }
 0x176   : > { %v5121_v40 = vpop.f32.mrf.mxu0 }
 0x177   : > { %v5123_v44 = vpop.f32.mrf.mxu1 }
 0x178   : > { %v4029_v43 = vpop.f32.mrf.mxu0 }
 0x179   : > { %v5127_v46 = vpop.f32.mrf.mxu1 }
 0x17a   : > { %v5125_v45 = vpop.f32.mrf.mxu0 }
 0x17b   : > { %v5131_v48 = vpop.f32.mrf.mxu1 }
 0x17c   : > { %v5129_v47 = vpop.f32.mrf.mxu0 }
 0x17d   : > { %v5135_v50 = vpop.f32.mrf.mxu1 }
 0x17e   : > { %v5133_v49 = vpop.f32.mrf.mxu0  ;;  %5264 = vst [vmem:[#allocation3_spill] sm:$0xff] %v5135_v50 }
 0x17f   : > { %5263 = vst [vmem:[#allocation2_spill] sm:$0xff] %v5133_v49  ;;  %v5139_v52 = vpop.f32.mrf.mxu1 }
 0x180   : > { %v5137_v51 = vpop.f32.mrf.mxu0  ;;  %5266 = vst [vmem:[#allocation5_spill] sm:$0xff] %v5139_v52 }
 0x181   : > { %5265 = vst [vmem:[#allocation4_spill] sm:$0xff] %v5137_v51  ;;  %v5141_v54 = vpop.f32.mrf.mxu1 }
 0x182   : > { %5267 = vst [vmem:[#allocation6_spill] sm:$0xff] %v5141_v54 }
 0x192   : > { %v4081_v53 = vpop.f32.mrf.mxu0 }
 0x193   : > { %v5143_v56 = vpop.f32.mrf.mxu1 }
 0x194   : > { %v4082_v55 = vpop.f32.mrf.mxu0 }
 0x195   : > { %v5147_v58 = vpop.f32.mrf.mxu1 }
 0x196   : > { %v5145_v57 = vpop.f32.mrf.mxu0 }
 0x197   : > { %v5151_v60 = vpop.f32.mrf.mxu1 }
 0x198   : > { %v5149_v59 = vpop.f32.mrf.mxu0  ;;  %5268 = vst [vmem:[#allocation7_spill] sm:$0xff] %v5151_v60  ;;  %v3915_v60 = vadd.f32 %v5069_v5, %v5067_v4 }
 0x199   : > { %v5155_v63 = vpop.f32.mrf.mxu1 }
 0x19a   : > { %v5153_v61 = vpop.f32.mrf.mxu0  ;;  %5270 = vst [vmem:[#allocation9_spill] sm:$0xff] %v5155_v63 }
 0x19b   : > { %5269 = vst [vmem:[#allocation8_spill] sm:$0xff] %v5153_v61  ;;  %v5157_v0 = vpop.f32.mrf.mxu1 }
 0x19c   : > { %5271 = vst [vmem:[#allocation10_spill] sm:$0xff] %v5157_v0  ;;  %v5159_v1 = vpop.f32.mrf.mxu0  ;;  %v2839_v0 = vadd.f32 %v3915_v60, %v5031_v27  ;;  %v3946_v27 = vadd.f32 %v5085_v13, %v5081_v11 }
 0x19d   : > { %5272 = vst [vmem:[#allocation11_spill] sm:$0xff] %v5159_v1  ;;  %v5161_v3 = vpop.f32.mrf.mxu1 }
 0x19e   : > { %5273 = vst [vmem:[#allocation12_spill] sm:$0xff] %v5161_v3  ;;  %v5163_v54 = vpop.f32.mrf.mxu0  ;;  %v3943_v3 = vadd.f32 %v5077_v9, %v5073_v7  ;;  %v3974_v7 = vadd.f32 %v3973_v24, %v3972_v22 }
 0x19f   : > { %5274 = vst [vmem:[#allocation13_spill] sm:$0xff] %v5163_v54  ;;  %v5165_v52 = vpop.f32.mrf.mxu1  ;;  %v3918_v54 = vadd.f32 %v5075_v8, %v5071_v6  ;;  %v3949_v8 = vadd.f32 %v5093_v17, %v5089_v15  ;;  %v4055_v17 = vadd.f32 %v4054_v42, %v5119_v39 }
 0x1a0   : > { %5275 = vst [vmem:[#allocation14_spill] sm:$0xff] %v5165_v52  ;;  %v5167_v51 = vpop.f32.mrf.mxu0  ;;  %v3971_v52 = vadd.f32 %v3970_v20, %v3969_v18  ;;  %v2888_v5 = vadd.f32 %v3943_v3, %v2839_v0  ;;  %v4027_v20 = vadd.f32 %v4026_v37, %v4025_v35  ;;  %v4005_v35 = vadd.f32 %v5111_v33, %v5107_v31 }
 0x1a1   : > { %5276 = vst [vmem:[#allocation15_spill] sm:$0xff] %v5167_v51  ;;  %v5171_v50 = vpop.f32.mrf.mxu1  ;;  %v3921_v51 = vadd.f32 %v5083_v12, %v5079_v10  ;;  %v3924_v10 = vadd.f32 %v5091_v16, %v5087_v14  ;;  %v4002_v14 = vadd.f32 %v5105_v30, %v5101_v28  ;;  %v4058_v31 = vadd.f32 %v5127_v46, %v5123_v44 }
 0x1a2   : > { %5277 = vst [vmem:[#allocation16_spill] sm:$0xff] %v5171_v50  ;;  %v2842_v50 = vadd.f32 %v3918_v54, %v5046_v41  ;;  %v2937_v60 = vadd.f32 %v3971_v52, %v2888_v5  ;;  %v3977_v41 = vadd.f32 %v5103_v29, %v5099_v26  ;;  %v5281_v54 = vld [vmem:[#allocation4_spill] sm:$0xff] }
 0x1a3   : > { %v2847_v6 = vadd.f32 %v3921_v51, %v5063_v62  ;;  %v2850_v24 = vadd.f32 %v3924_v10, %v5065_v2  ;;  %v3952_v62 = vadd.f32 %v5097_v21, %v5095_v19  ;;  %v3980_v2 = vadd.f32 %v5113_v34, %v5109_v32  ;;  %v5282_v44 = vld [vmem:[#allocation8_spill] sm:$0xff] }
 0x1a4   : > { %v2891_v18 = vadd.f32 %v3946_v27, %v2842_v50  ;;  %v4083_v50 = vadd.f32 %v4082_v55, %v4081_v53  ;;  %v4033_v21 = vadd.f32 %v5129_v47, %v5125_v45  ;;  %v4111_v32 = vadd.f32 %v5147_v58, %v5143_v56  ;;  %v5279_v47 = vld [vmem:[#allocation3_spill] sm:$0xff]  ;;  %v5280_v53 = vld [vmem:[#allocation2_spill] sm:$0xff] }
 0x1a5   : > { %v2896_v22 = vadd.f32 %v3949_v8, %v2847_v6  ;;  %v2899_v19 = vadd.f32 %v3952_v62, %v2850_v24  ;;  %v4086_v34 = vadd.f32 %v5149_v59, %v5145_v57  ;;  %v4061_v52 = vadd.f32 %v5279_v47, %v5131_v48  ;;  %v5283_v46 = vld [vmem:[#allocation11_spill] sm:$0xff]  ;;  %v5284_v57 = vld [vmem:[#allocation5_spill] sm:$0xff]  ;;  %v5285_v59 = vld [vmem:[#allocation6_spill] sm:$0xff] }
 0x1a6   : > { %v2940_v13 = vadd.f32 %v3974_v7, %v2891_v18  ;;  %v4036_v55 = vadd.f32 %v5281_v54, %v5280_v53  ;;  %v4089_v5 = vadd.f32 %v5283_v46, %v5282_v44  ;;  %v4064_v7 = vadd.f32 %v5285_v59, %v5284_v57  ;;  %v5286_v48 = vld [vmem:[#allocation7_spill] sm:$0xff]  ;;  %v5287_v8 = vld [vmem:[#allocation9_spill] sm:$0xff] }
 0x1a7   : > { %v2945_v29 = vadd.f32 %v3977_v41, %v2896_v22  ;;  %v4114_v10 = vadd.f32 %v5287_v8, %v5286_v48  ;;  %v5290_v22 = vld [vmem:[#allocation12_spill] sm:$0xff]  ;;  %v5291_v62 = vld [vmem:[#allocation13_spill] sm:$0xff] }
 0x1a8   : > { %v2989_v37 = vadd.f32 %v4002_v14, %v2940_v13  ;;  %v5289_v13 = vld [vmem:[#allocation10_spill] sm:$0xff]  ;;  %v5292_v14 = vld [vmem:[#allocation15_spill] sm:$0xff] }
 0x1a9   : > { %v2994_v42 = vadd.f32 %v4005_v35, %v2945_v29  ;;  %v4117_v24 = vadd.f32 %v5290_v22, %v5289_v13 }
 0x1ab   : > { %v3043_v45 = vadd.f32 %v4033_v21, %v2994_v42  ;;  %v5294_v42 = vld [vmem:[#allocation16_spill] sm:$0xff] }
 0x1ad   : > { %v3092_v58 = vadd.f32 %v4061_v52, %v3043_v45 }
 0x1b2   : > { %v4137_v49 = vpop.f32.mrf.mxu0 }
 0x1b3   : > { %v5173_v61 = vpop.f32.mrf.mxu1 }
 0x1b4   : > { %5278 = vst [vmem:[#allocation17_spill] sm:$0xff] %v5173_v61  ;;  %v4138_v63 = vpop.f32.mrf.mxu0  ;;  %v3999_v61 = vadd.f32 %v3998_v25, %v3997_v23  ;;  %v4030_v25 = vadd.f32 %v4029_v43, %v5121_v40  ;;  %v2948_v40 = vadd.f32 %v3980_v2, %v2899_v19  ;;  %v4008_v43 = vadd.f32 %v5117_v38, %v5115_v36 }
 0x1b5   : > { %v5180_v1 = vpop.f32.mrf.mxu1  ;;  %v4139_v36 = vadd.f32 %v4138_v63, %v4137_v49 }
 0x1b6   : > { %v5184_v4 = vpop.f32.mrf.mxu0  ;;  %v2986_v11 = vadd.f32 %v3999_v61, %v2937_v60  ;;  %v3038_v51 = vadd.f32 %v4030_v25, %v2989_v37  ;;  %v2997_v3 = vadd.f32 %v4008_v43, %v2948_v40 }
 0x1b7   : > { %v5189_v9 = vpop.f32.mrf.mxu1 }
 0x1b8   : > { %v4141_v12 = vpop.f32.mrf.mxu0  ;;  %v3035_v16 = vadd.f32 %v4027_v20, %v2986_v11  ;;  %v3087_v0 = vadd.f32 %v4058_v31, %v3038_v51  ;;  %v3046_v60 = vadd.f32 %v4036_v55, %v2997_v3  ;;  %v3141_v11 = vadd.f32 %v4089_v5, %v3092_v58  ;;  %v5293_v51 = vld [vmem:[#allocation14_spill] sm:$0xff] }
 0x1b9   : > { %v5198_v23 = vpop.f32.mrf.mxu1  ;;  %v4142_v63 = vadd.f32 %v4141_v12, %v5184_v4  ;;  %v4120_v40 = vadd.f32 %v5294_v42, %v5293_v51 }
 0x1ba   : > { %v4143_v15 = vpop.f32.mrf.mxu0  ;;  %v3084_v30 = vadd.f32 %v4055_v17, %v3035_v16  ;;  %v3136_v56 = vadd.f32 %v4086_v34, %v3087_v0  ;;  %v4092_v16 = vadd.f32 %v5292_v14, %v5291_v62  ;;  %v3095_v35 = vadd.f32 %v4064_v7, %v3046_v60 }
 0x1bb   : > { %v4171_v26 = vpop.f32.mrf.mxu1  ;;  %v5288_v20 = vld [vmem:[#allocation17_spill] sm:$0xff]  ;;  %v3190_v4 = vadd.f32 %v4117_v24, %v3141_v11  ;;  %v4170_v43 = vadd.f32 %v5198_v23, %v5189_v9 }
 0x1bc   : > { %v4144_v28 = vpop.f32.mrf.mxu0  ;;  %v3133_v33 = vadd.f32 %v4083_v50, %v3084_v30  ;;  %v4167_v49 = vadd.f32 %v5180_v1, %v5288_v20  ;;  %v3185_v25 = vadd.f32 %v4114_v10, %v3136_v56  ;;  %v3144_v12 = vadd.f32 %v4092_v16, %v3095_v35 }
 0x1bd   : > { %v4172_v39 = vpop.f32.mrf.mxu1  ;;  %v4145_v2 = vadd.f32 %v4144_v28, %v4143_v15 }
 0x1be   : > { %v4146_v61 = vpop.f32.mrf.mxu0  ;;  %v3182_v27 = vadd.f32 %v4111_v32, %v3133_v33  ;;  %v3234_v19 = vadd.f32 %v4142_v63, %v3185_v25  ;;  %v4173_v15 = vadd.f32 %v4172_v39, %v4171_v26  ;;  %v3193_v23 = vadd.f32 %v4120_v40, %v3144_v12 }
 0x1bf   : > { %v4174_v38 = vpop.f32.mrf.mxu1  ;;  %v3239_v34 = vadd.f32 %v4145_v2, %v3190_v4 }
 0x1c0   : > { %v4147_v6 = vpop.f32.mrf.mxu0  ;;  %v3231_v18 = vadd.f32 %v4139_v36, %v3182_v27  ;;  %v3283_v45 = vadd.f32 %v4170_v43, %v3234_v19 }
 0x1c1   : > { %v4175_v41 = vpop.f32.mrf.mxu1  ;;  %v4148_v47 = vadd.f32 %v4147_v6, %v4146_v61  ;;  %v3288_v0 = vadd.f32 %v4173_v15, %v3239_v34 }
 0x1c2   : > { %v3280_v50 = vadd.f32 %v4167_v49, %v3231_v18  ;;  %v4176_v44 = vadd.f32 %v4175_v41, %v4174_v38 }
 0x1c3   : > { %v3242_v3 = vadd.f32 %v4148_v47, %v3193_v23 }
 0x1c5   : > { %v3291_v59 = vadd.f32 %v4176_v44, %v3242_v3 }
 0x1d2   : > { %v4193_v17 = vpop.f32.mrf.mxu0 }
 0x1d3   : > { %v4221_v29 = vpop.f32.mrf.mxu1 }
 0x1d4   : > { %v4194_v37 = vpop.f32.mrf.mxu0 }
 0x1d5   : > { %v4195_v21 = vadd.f32 %v4194_v37, %v4193_v17  ;;  %v4222_v1 = vpop.f32.mrf.mxu1 }
 0x1d6   : > { %v4196_v30 = vpop.f32.mrf.mxu0  ;;  %v4223_v33 = vadd.f32 %v4222_v1, %v4221_v29 }
 0x1d7   : > { %v3329_v31 = vadd.f32 %v4195_v21, %v3280_v50  ;;  %v4224_v32 = vpop.f32.mrf.mxu1 }
 0x1d8   : > { %v4197_v28 = vpop.f32.mrf.mxu0 }
 0x1d9   : > { %v3378_v52 = vadd.f32 %v4223_v33, %v3329_v31  ;;  %v4198_v53 = vadd.f32 %v4197_v28, %v4196_v30  ;;  %v4225_v54 = vpop.f32.mrf.mxu1 }
 0x1da   : > { %v4199_v9 = vpop.f32.mrf.mxu0  ;;  %v4226_v26 = vadd.f32 %v4225_v54, %v4224_v32 }
 0x1db   : > { %3393 = vst.msk [vmem:[%s5246_s9] sm:$0xff] %vm3392_vm0, %v3378_v52  ;;  %v3332_v55 = vadd.f32 %v4198_v53, %v3283_v45  ;;  %v4227_v39 = vpop.f32.mrf.mxu1 }
 0x1dc   : > { %v4200_v36 = vpop.f32.mrf.mxu0 }
 0x1dd   : > { %v3381_v46 = vadd.f32 %v4226_v26, %v3332_v55  ;;  %v4201_v5 = vadd.f32 %v4200_v36, %v4199_v9  ;;  %v4228_v61 = vpop.f32.mrf.mxu1 }
 0x1de   : > { %v4202_v27 = vpop.f32.mrf.mxu0  ;;  %v4229_v58 = vadd.f32 %v4228_v61, %v4227_v39 }
 0x1df   : > { %3394 = vst.msk [vmem:[%s5246_s9 + $0x8] sm:$0xff] %vm3392_vm0, %v3381_v46  ;;  %v3337_v56 = vadd.f32 %v4201_v5, %v3288_v0  ;;  %v4230_v60 = vpop.f32.mrf.mxu1 }
 0x1e0   : > { %v4203_v57 = vpop.f32.mrf.mxu0 }
 0x1e1   : > { %v3386_v7 = vadd.f32 %v4229_v58, %v3337_v56  ;;  %v4204_v6 = vadd.f32 %v4203_v57, %v4202_v27  ;;  %v4231_v48 = vpop.f32.mrf.mxu1 }
 0x1e2   : > { %v4232_v10 = vadd.f32 %v4231_v48, %v4230_v60 }
 0x1e3   : > { %3395 = vst.msk [vmem:[%s5246_s9 + $0x10] sm:$0xff] %vm3392_vm0, %v3386_v7  ;;  %v3340_v8 = vadd.f32 %v4204_v6, %v3291_v59 }
 0x1e5   : > { %v3389_v38 = vadd.f32 %v4232_v10, %v3340_v8 }
 0x1e7   : > { %3396 = vst.msk [vmem:[%s5246_s9 + $0x18] sm:$0xff] %vm3392_vm0, %v3389_v38 }
 0x1e8 PF: > { %s13_s12 = sadd.s32 1, %s4503_s12  }
 0x1e9   : > { %p10_p4 = scmp.ge.s32.totalorder %s13_s12, 4  }
 0x1eb   :  { %12 = sbr.rel (!%p10_p4) target bundleno = 1 (0x1), region = 62 }

</bundles_post_ra>
